<compile_context>
chip_gen: v7x
topology: tpu7x:2x2x1
jax: 0.10.0
libtpu: 0.0.40
codegen_flags: <defaults>
</compile_context>

<pallas_src>
import math

import jax
import jax.numpy as jnp
import numpy as np
from jax import lax
from jax.experimental import pallas as pl
from jax.experimental.pallas import tpu as pltpu


# ----------------------------------------------------------------------------
# In-kernel math helpers (f32)
# ----------------------------------------------------------------------------
def _layernorm(u, g, b, eps=1e-5):
    mu = jnp.mean(u, axis=-1, keepdims=True)
    var = jnp.mean((u - mu) ** 2, axis=-1, keepdims=True)
    return (u - mu) * lax.rsqrt(var + eps) * g + b


def _gelu_tanh(u):
    c = math.sqrt(2.0 / math.pi)
    return 0.5 * u * (1.0 + jnp.tanh(c * (u + 0.044715 * u * u * u)))


# ----------------------------------------------------------------------------
# Kernel
# ----------------------------------------------------------------------------
def make_block_kernel(T, TQ, C, n_head):
    hd = C // n_head
    scale = 1.0 / math.sqrt(hd)

    def kernel(xf_ref,
               ln1g_ref, ln1b_ref,
               wq_ref, wk_ref, wv_ref, bq_ref, bk_ref, bv_ref,
               wpr_ref, bpr_ref,
               ln2g_ref, ln2b_ref,
               wfc_ref, bfc_ref, wp2_ref, bp2_ref,
               o_ref, yslab_ref):
        qi = pl.program_id(1)
        q_start = pl.multiple_of(qi * TQ, TQ)          # global row offset of this tile

        # f32 activations; bf16 only as matmul operands (f32 accumulation).
        x_full = xf_ref[0].astype(jnp.float32)                       # (T, C)
        x_q = xf_ref[0, pl.ds(q_start, TQ), :].astype(jnp.float32)   # (TQ, C)

        # -------------------- attention branch --------------------
        ln1g = ln1g_ref[0]
        ln1b = ln1b_ref[0]
        h_full_b = _layernorm(x_full, ln1g, ln1b).astype(jnp.bfloat16)   # (T, C)
        h_q_b = _layernorm(x_q, ln1g, ln1b).astype(jnp.bfloat16)         # (TQ, C)

        # K/V over the whole sequence (causal attention needs all prior keys);
        # Q only for the tile rows.
        k_all = (jnp.dot(h_full_b, wk_ref[...], preferred_element_type=jnp.float32)
                 + bk_ref[0]).astype(jnp.bfloat16)                       # (T, C)
        v_all = (jnp.dot(h_full_b, wv_ref[...], preferred_element_type=jnp.float32)
                 + bv_ref[0]).astype(jnp.bfloat16)                       # (T, C)
        q_all = (jnp.dot(h_q_b, wq_ref[...], preferred_element_type=jnp.float32)
                 + bq_ref[0]).astype(jnp.bfloat16)                       # (TQ, C)

        row = lax.broadcasted_iota(jnp.int32, (TQ, T), 0) + q_start
        col = lax.broadcasted_iota(jnp.int32, (TQ, T), 1)
        causal = col <= row

        # Per-head attention; head outputs land (as bf16) in a (TQ, C) VMEM
        # slab so the output projection runs once with a full-C contraction
        # (no narrow K=hd matmuls, no long-lived f32 register accumulator).
        for hh in range(n_head):
            sl = slice(hh * hd, (hh + 1) * hd)
            q = q_all[:, sl]                                             # (TQ, hd)
            k = k_all[:, sl]                                             # (T,  hd)
            v = v_all[:, sl]                                             # (T,  hd)
            s = lax.dot_general(q, k, (((1,), (1,)), ((), ())),
                                preferred_element_type=jnp.float32) * scale
            s = jnp.where(causal, s, -1e30)
            s = s - jnp.max(s, axis=-1, keepdims=True)
            p = jnp.exp(s)
            denom = jnp.sum(p, axis=-1, keepdims=True)
            p = p * pl.reciprocal(denom, approx=True)                    # EUP, not VALU
            yslab_ref[:, sl] = jnp.dot(
                p.astype(jnp.bfloat16), v,
                preferred_element_type=jnp.float32).astype(jnp.bfloat16)

        y = jnp.dot(yslab_ref[...], wpr_ref[...],
                    preferred_element_type=jnp.float32) + bpr_ref[0]
        x1 = x_q + y                                                     # (TQ, C) f32

        # -------------------- MLP branch --------------------
        h2 = _layernorm(x1, ln2g_ref[0], ln2b_ref[0])
        ff = jnp.dot(h2.astype(jnp.bfloat16), wfc_ref[...],
                     preferred_element_type=jnp.float32) + bfc_ref[0]
        ff = _gelu_tanh(ff)
        out = x1 + jnp.dot(ff.astype(jnp.bfloat16), wp2_ref[...],
                           preferred_element_type=jnp.float32) + bp2_ref[0]

        o_ref[0] = out.astype(o_ref.dtype)

    return kernel


# ----------------------------------------------------------------------------
# Wrapper
# ----------------------------------------------------------------------------
def _choose_tq(T):
    for cand in (256, 128, 64, 32, 16, 8):
        if T % cand == 0:
            return cand
    return T


def _vmem_limit_bytes(T, TQ, C):
    bf16, f32 = 2, 4
    weights = 12 * C * C * bf16                 # qkv + attn_proj + fc + mlp_proj (bf16)
    small = 32 * C * f32                        # ln params + biases (generous)
    x_io = (T * C + TQ * C) * f32 * 2           # x in / out tiles, double-buffered
    slab = TQ * C * bf16                        # per-head output slab (bf16)
    inter = (3 * T * C + 4 * TQ * C + 2 * TQ * T) * f32 + 2 * T * C * bf16
    est = 2 * weights + small + x_io + slab + inter
    return int(min(128 * 1024 * 1024, max(32 * 1024 * 1024, 1.5 * est)))


def block_forward(x, params, n_head):
    B, T, C = x.shape
    TQ = _choose_tq(T)
    num_qt = T // TQ
    kernel = make_block_kernel(T, TQ, C, n_head)

    bf16 = jnp.bfloat16
    w_qkv = params["w_qkv"]
    b_qkv = params["b_qkv"]
    # Weights go in as bf16 (MXU operands); LN params / biases stay f32.
    param_list = [
        params["ln1_g"], params["ln1_b"],
        w_qkv[:, 0:C].astype(bf16),
        w_qkv[:, C:2 * C].astype(bf16),
        w_qkv[:, 2 * C:3 * C].astype(bf16),
        b_qkv[:, 0:C], b_qkv[:, C:2 * C], b_qkv[:, 2 * C:3 * C],
        params["w_attn_proj"].astype(bf16), params["b_attn_proj"],
        params["ln2_g"], params["ln2_b"],
        params["w_fc"].astype(bf16), params["b_fc"],
        params["w_mlp_proj"].astype(bf16), params["b_mlp_proj"],
    ]

    def full_spec(p):
        # Constant block index across the grid -> weight stays VMEM-resident.
        return pl.BlockSpec(p.shape, lambda b, qi, nd=p.ndim: (0,) * nd)

    in_specs = (
        [pl.BlockSpec((1, T, C), lambda b, qi: (b, 0, 0))]     # whole sequence
        + [full_spec(p) for p in param_list]
    )

    return pl.pallas_call(
        kernel,
        out_shape=jax.ShapeDtypeStruct((B, T, C), x.dtype),
        grid_spec=pltpu.PrefetchScalarGridSpec(
            num_scalar_prefetch=0,
            grid=(B, num_qt),
            in_specs=in_specs,
            out_specs=pl.BlockSpec((1, TQ, C), lambda b, qi: (b, qi, 0)),
            scratch_shapes=[pltpu.VMEM((TQ, C), jnp.bfloat16)],
        ),
        compiler_params=pltpu.CompilerParams(
            dimension_semantics=("parallel", "parallel"),
            vmem_limit_bytes=_vmem_limit_bytes(T, TQ, C),
        ),
    )(x, *param_list)


# ----------------------------------------------------------------------------
# Pure-JAX f32 reference (mirrors the PyTorch Block forward)
# ----------------------------------------------------------------------------
def block_reference(x, params, n_head):
    B, T, C = x.shape
    hd = C // n_head

    def ln(u, g, b):
        mu = jnp.mean(u, axis=-1, keepdims=True)
        var = jnp.mean((u - mu) ** 2, axis=-1, keepdims=True)
        return (u - mu) / jnp.sqrt(var + 1e-5) * g[0] + b[0]

    h = ln(x, params["ln1_g"], params["ln1_b"])
    qkv = h @ params["w_qkv"] + params["b_qkv"][0]
    q, k, v = jnp.split(qkv, 3, axis=-1)
    q = q.reshape(B, T, n_head, hd).transpose(0, 2, 1, 3)
    k = k.reshape(B, T, n_head, hd).transpose(0, 2, 1, 3)
    v = v.reshape(B, T, n_head, hd).transpose(0, 2, 1, 3)
    s = jnp.einsum("bhtd,bhsd->bhts", q, k) / math.sqrt(hd)
    mask = jnp.tril(jnp.ones((T, T), bool))
    s = jnp.where(mask, s, -1e30)
    p = jax.nn.softmax(s, axis=-1)
    y = jnp.einsum("bhts,bhsd->bhtd", p, v).transpose(0, 2, 1, 3).reshape(B, T, C)
    y = y @ params["w_attn_proj"] + params["b_attn_proj"][0]
    x1 = x + y

    h2 = ln(x1, params["ln2_g"], params["ln2_b"])
    ff = h2 @ params["w_fc"] + params["b_fc"][0]
    c = math.sqrt(2.0 / math.pi)
    ff = 0.5 * ff * (1.0 + jnp.tanh(c * (ff + 0.044715 * ff ** 3)))
    return x1 + ff @ params["w_mlp_proj"] + params["b_mlp_proj"][0]


# ----------------------------------------------------------------------------
# Deterministic parameter init (shapes from Block.__init__)
# ----------------------------------------------------------------------------
def init_params(key, C):
    ks = jax.random.split(key, 8)
    s = 0.02
    f32 = jnp.float32
    return {
        "ln1_g": jnp.ones((1, C), f32),
        "ln1_b": jnp.zeros((1, C), f32),
        "w_qkv": s * jax.random.normal(ks[0], (C, 3 * C), f32),
        "b_qkv": s * jax.random.normal(ks[1], (1, 3 * C), f32),
        "w_attn_proj": s * jax.random.normal(ks[2], (C, C), f32),
        "b_attn_proj": s * jax.random.normal(ks[3], (1, C), f32),
        "ln2_g": jnp.ones((1, C), f32),
        "ln2_b": jnp.zeros((1, C), f32),
        "w_fc": s * jax.random.normal(ks[4], (C, 4 * C), f32),
        "b_fc": s * jax.random.normal(ks[5], (1, 4 * C), f32),
        "w_mlp_proj": s * jax.random.normal(ks[6], (4 * C, C), f32),
        "b_mlp_proj": s * jax.random.normal(ks[7], (1, C), f32),
    }


if __name__ == "__main__":
    B, T, C, N_HEAD = 2, 8, 32, 4   # block_size = T = 8

    key = jax.random.PRNGKey(0)
    kx, kp = jax.random.split(key)
    x = jax.random.normal(kx, (B, T, C), jnp.float32)
    params = init_params(kp, C)

    out = block_forward(x, params, N_HEAD)
    out = jax.block_until_ready(out)

    ref = block_reference(x, params, N_HEAD)
    # bf16 matmul operands (f32 accumulation) -> compare against the f32
    # reference with a correspondingly looser tolerance.
    np.testing.assert_allclose(np.asarray(out), np.asarray(ref), atol=1e-2, rtol=1e-2)

    print("KERNEL_OK")
</pallas_src>

<mosaic_0001>
module attributes {stable_mosaic.version = 11 : i64} {
  func.func @kernel(%arg0: i32, %arg1: i32, %arg2: memref<1x8x32xf32, #tpu.memory_space<vmem>>, %arg3: memref<1x32xf32, #tpu.memory_space<vmem>>, %arg4: memref<1x32xf32, #tpu.memory_space<vmem>>, %arg5: memref<32x32xbf16, #tpu.memory_space<vmem>>, %arg6: memref<32x32xbf16, #tpu.memory_space<vmem>>, %arg7: memref<32x32xbf16, #tpu.memory_space<vmem>>, %arg8: memref<1x32xf32, #tpu.memory_space<vmem>>, %arg9: memref<1x32xf32, #tpu.memory_space<vmem>>, %arg10: memref<1x32xf32, #tpu.memory_space<vmem>>, %arg11: memref<32x32xbf16, #tpu.memory_space<vmem>>, %arg12: memref<1x32xf32, #tpu.memory_space<vmem>>, %arg13: memref<1x32xf32, #tpu.memory_space<vmem>>, %arg14: memref<1x32xf32, #tpu.memory_space<vmem>>, %arg15: memref<32x128xbf16, #tpu.memory_space<vmem>>, %arg16: memref<1x128xf32, #tpu.memory_space<vmem>>, %arg17: memref<128x32xbf16, #tpu.memory_space<vmem>>, %arg18: memref<1x32xf32, #tpu.memory_space<vmem>>, %arg19: memref<1x8x32xf32, #tpu.memory_space<vmem>>, %arg20: memref<8x32xbf16, #tpu.memory_space<vmem>>) attributes {dimension_semantics = [#tpu.dimension_semantics<parallel>, #tpu.dimension_semantics<parallel>], iteration_bounds = array<i64: 2, 1>, scalar_prefetch = 0 : i64, scratch_operands = 1 : i64, tpu.core_type = #tpu.core_type<tc>, window_params = [{transform_indices = @transform_0, window_bounds = array<i64: 1, 8, 32>}, {pipeline_mode = #tpu.pipeline_mode<synchronous>, transform_indices = @transform_1, window_bounds = array<i64: 1, 32>}, {pipeline_mode = #tpu.pipeline_mode<synchronous>, transform_indices = @transform_2, window_bounds = array<i64: 1, 32>}, {pipeline_mode = #tpu.pipeline_mode<synchronous>, transform_indices = @transform_3, window_bounds = array<i64: 32, 32>}, {pipeline_mode = #tpu.pipeline_mode<synchronous>, transform_indices = @transform_4, window_bounds = array<i64: 32, 32>}, {pipeline_mode = #tpu.pipeline_mode<synchronous>, transform_indices = @transform_5, window_bounds = array<i64: 32, 32>}, {pipeline_mode = #tpu.pipeline_mode<synchronous>, transform_indices = @transform_6, window_bounds = array<i64: 1, 32>}, {pipeline_mode = #tpu.pipeline_mode<synchronous>, transform_indices = @transform_7, window_bounds = array<i64: 1, 32>}, {pipeline_mode = #tpu.pipeline_mode<synchronous>, transform_indices = @transform_8, window_bounds = array<i64: 1, 32>}, {pipeline_mode = #tpu.pipeline_mode<synchronous>, transform_indices = @transform_9, window_bounds = array<i64: 32, 32>}, {pipeline_mode = #tpu.pipeline_mode<synchronous>, transform_indices = @transform_10, window_bounds = array<i64: 1, 32>}, {pipeline_mode = #tpu.pipeline_mode<synchronous>, transform_indices = @transform_11, window_bounds = array<i64: 1, 32>}, {pipeline_mode = #tpu.pipeline_mode<synchronous>, transform_indices = @transform_12, window_bounds = array<i64: 1, 32>}, {pipeline_mode = #tpu.pipeline_mode<synchronous>, transform_indices = @transform_13, window_bounds = array<i64: 32, 128>}, {pipeline_mode = #tpu.pipeline_mode<synchronous>, transform_indices = @transform_14, window_bounds = array<i64: 1, 128>}, {pipeline_mode = #tpu.pipeline_mode<synchronous>, transform_indices = @transform_15, window_bounds = array<i64: 128, 32>}, {pipeline_mode = #tpu.pipeline_mode<synchronous>, transform_indices = @transform_16, window_bounds = array<i64: 1, 32>}, {transform_indices = @transform_17, window_bounds = array<i64: 1, 8, 32>}]} {
    %c8_i32 = arith.constant 8 : i32
    %0 = arith.muli %arg1, %c8_i32 : i32
    %1 = tpu.assume_multiple %0, 8 : i32
    %c0 = arith.constant 0 : index
    %c0_0 = arith.constant 0 : index
    %c0_1 = arith.constant 0 : index
    %2 = vector.load %arg2[%c0, %c0_0, %c0_1] : memref<1x8x32xf32, #tpu.memory_space<vmem>>, vector<1x8x32xf32>
    %3 = vector.shape_cast %2 : vector<1x8x32xf32> to vector<8x32xf32>
    %c0_2 = arith.constant 0 : index
    %4 = arith.index_cast %1 : i32 to index
    %c0_3 = arith.constant 0 : index
    %5 = vector.load %arg2[%c0_2, %4, %c0_3] : memref<1x8x32xf32, #tpu.memory_space<vmem>>, vector<1x8x32xf32>
    %6 = vector.shape_cast %5 : vector<1x8x32xf32> to vector<8x32xf32>
    %c0_4 = arith.constant 0 : index
    %c0_5 = arith.constant 0 : index
    %7 = vector.load %arg3[%c0_4, %c0_5] : memref<1x32xf32, #tpu.memory_space<vmem>>, vector<1x32xf32>
    %8 = vector.shape_cast %7 : vector<1x32xf32> to vector<32xf32>
    %c0_6 = arith.constant 0 : index
    %c0_7 = arith.constant 0 : index
    %9 = vector.load %arg4[%c0_6, %c0_7] : memref<1x32xf32, #tpu.memory_space<vmem>>, vector<1x32xf32>
    %10 = vector.shape_cast %9 : vector<1x32xf32> to vector<32xf32>
    %cst = arith.constant dense<0.000000e+00> : vector<8xf32>
    %11 = vector.multi_reduction <add>, %3, %cst [1] : vector<8x32xf32> to vector<8xf32>
    %12 = vector.shape_cast %11 : vector<8xf32> to vector<8x1xf32>
    %cst_8 = arith.constant 3.200000e+01 : f32
    %13 = vector.broadcast %cst_8 : f32 to vector<8x1xf32>
    %14 = arith.divf %12, %13 : vector<8x1xf32>
    %15 = vector.broadcast %14 : vector<8x1xf32> to vector<8x32xf32>
    %16 = arith.subf %3, %15 : vector<8x32xf32>
    %17 = arith.mulf %16, %16 : vector<8x32xf32>
    %cst_9 = arith.constant dense<0.000000e+00> : vector<8xf32>
    %18 = vector.multi_reduction <add>, %17, %cst_9 [1] : vector<8x32xf32> to vector<8xf32>
    %19 = vector.shape_cast %18 : vector<8xf32> to vector<8x1xf32>
    %cst_10 = arith.constant 3.200000e+01 : f32
    %20 = vector.broadcast %cst_10 : f32 to vector<8x1xf32>
    %21 = arith.divf %19, %20 : vector<8x1xf32>
    %22 = vector.broadcast %14 : vector<8x1xf32> to vector<8x32xf32>
    %23 = arith.subf %3, %22 : vector<8x32xf32>
    %cst_11 = arith.constant 9.99999974E-6 : f32
    %24 = vector.broadcast %cst_11 : f32 to vector<8x1xf32>
    %25 = arith.addf %21, %24 : vector<8x1xf32>
    %26 = math.rsqrt %25 : vector<8x1xf32>
    %27 = vector.broadcast %26 : vector<8x1xf32> to vector<8x32xf32>
    %28 = arith.mulf %23, %27 : vector<8x32xf32>
    %29 = vector.shape_cast %8 : vector<32xf32> to vector<1x32xf32>
    %30 = vector.broadcast %29 : vector<1x32xf32> to vector<8x32xf32>
    %31 = arith.mulf %28, %30 : vector<8x32xf32>
    %32 = vector.shape_cast %10 : vector<32xf32> to vector<1x32xf32>
    %33 = vector.broadcast %32 : vector<1x32xf32> to vector<8x32xf32>
    %34 = arith.addf %31, %33 : vector<8x32xf32>
    %35 = arith.truncf %34 : vector<8x32xf32> to vector<8x32xbf16>
    %cst_12 = arith.constant dense<0.000000e+00> : vector<8xf32>
    %36 = vector.multi_reduction <add>, %6, %cst_12 [1] : vector<8x32xf32> to vector<8xf32>
    %37 = vector.shape_cast %36 : vector<8xf32> to vector<8x1xf32>
    %cst_13 = arith.constant 3.200000e+01 : f32
    %38 = vector.broadcast %cst_13 : f32 to vector<8x1xf32>
    %39 = arith.divf %37, %38 : vector<8x1xf32>
    %40 = vector.broadcast %39 : vector<8x1xf32> to vector<8x32xf32>
    %41 = arith.subf %6, %40 : vector<8x32xf32>
    %42 = arith.mulf %41, %41 : vector<8x32xf32>
    %cst_14 = arith.constant dense<0.000000e+00> : vector<8xf32>
    %43 = vector.multi_reduction <add>, %42, %cst_14 [1] : vector<8x32xf32> to vector<8xf32>
    %44 = vector.shape_cast %43 : vector<8xf32> to vector<8x1xf32>
    %cst_15 = arith.constant 3.200000e+01 : f32
    %45 = vector.broadcast %cst_15 : f32 to vector<8x1xf32>
    %46 = arith.divf %44, %45 : vector<8x1xf32>
    %47 = vector.broadcast %39 : vector<8x1xf32> to vector<8x32xf32>
    %48 = arith.subf %6, %47 : vector<8x32xf32>
    %cst_16 = arith.constant 9.99999974E-6 : f32
    %49 = vector.broadcast %cst_16 : f32 to vector<8x1xf32>
    %50 = arith.addf %46, %49 : vector<8x1xf32>
    %51 = math.rsqrt %50 : vector<8x1xf32>
    %52 = vector.broadcast %51 : vector<8x1xf32> to vector<8x32xf32>
    %53 = arith.mulf %48, %52 : vector<8x32xf32>
    %54 = vector.shape_cast %8 : vector<32xf32> to vector<1x32xf32>
    %55 = vector.broadcast %54 : vector<1x32xf32> to vector<8x32xf32>
    %56 = arith.mulf %53, %55 : vector<8x32xf32>
    %57 = vector.shape_cast %10 : vector<32xf32> to vector<1x32xf32>
    %58 = vector.broadcast %57 : vector<1x32xf32> to vector<8x32xf32>
    %59 = arith.addf %56, %58 : vector<8x32xf32>
    %60 = arith.truncf %59 : vector<8x32xf32> to vector<8x32xbf16>
    %c0_17 = arith.constant 0 : index
    %c0_18 = arith.constant 0 : index
    %61 = vector.load %arg6[%c0_17, %c0_18] : memref<32x32xbf16, #tpu.memory_space<vmem>>, vector<32x32xbf16>
    %cst_19 = arith.constant dense<0.000000e+00> : vector<8x32xf32>
    %62 = tpu.matmul %35, %61, %cst_19 {dimension_numbers = #tpu.dot_dimension_numbers<[1], [0], [0], [1], [0, 0, 1, 1], [], []>} : vector<8x32xbf16>, vector<32x32xbf16>, vector<8x32xf32> -> vector<8x32xf32>
    %c0_20 = arith.constant 0 : index
    %c0_21 = arith.constant 0 : index
    %63 = vector.load %arg9[%c0_20, %c0_21] : memref<1x32xf32, #tpu.memory_space<vmem>>, vector<1x32xf32>
    %64 = vector.shape_cast %63 : vector<1x32xf32> to vector<32xf32>
    %65 = vector.shape_cast %64 : vector<32xf32> to vector<1x32xf32>
    %66 = vector.broadcast %65 : vector<1x32xf32> to vector<8x32xf32>
    %67 = arith.addf %62, %66 : vector<8x32xf32>
    %68 = arith.truncf %67 : vector<8x32xf32> to vector<8x32xbf16>
    %c0_22 = arith.constant 0 : index
    %c0_23 = arith.constant 0 : index
    %69 = vector.load %arg7[%c0_22, %c0_23] : memref<32x32xbf16, #tpu.memory_space<vmem>>, vector<32x32xbf16>
    %cst_24 = arith.constant dense<0.000000e+00> : vector<8x32xf32>
    %70 = tpu.matmul %35, %69, %cst_24 {dimension_numbers = #tpu.dot_dimension_numbers<[1], [0], [0], [1], [0, 0, 1, 1], [], []>} : vector<8x32xbf16>, vector<32x32xbf16>, vector<8x32xf32> -> vector<8x32xf32>
    %c0_25 = arith.constant 0 : index
    %c0_26 = arith.constant 0 : index
    %71 = vector.load %arg10[%c0_25, %c0_26] : memref<1x32xf32, #tpu.memory_space<vmem>>, vector<1x32xf32>
    %72 = vector.shape_cast %71 : vector<1x32xf32> to vector<32xf32>
    %73 = vector.shape_cast %72 : vector<32xf32> to vector<1x32xf32>
    %74 = vector.broadcast %73 : vector<1x32xf32> to vector<8x32xf32>
    %75 = arith.addf %70, %74 : vector<8x32xf32>
    %76 = arith.truncf %75 : vector<8x32xf32> to vector<8x32xbf16>
    %c0_27 = arith.constant 0 : index
    %c0_28 = arith.constant 0 : index
    %77 = vector.load %arg5[%c0_27, %c0_28] : memref<32x32xbf16, #tpu.memory_space<vmem>>, vector<32x32xbf16>
    %cst_29 = arith.constant dense<0.000000e+00> : vector<8x32xf32>
    %78 = tpu.matmul %60, %77, %cst_29 {dimension_numbers = #tpu.dot_dimension_numbers<[1], [0], [0], [1], [0, 0, 1, 1], [], []>} : vector<8x32xbf16>, vector<32x32xbf16>, vector<8x32xf32> -> vector<8x32xf32>
    %c0_30 = arith.constant 0 : index
    %c0_31 = arith.constant 0 : index
    %79 = vector.load %arg8[%c0_30, %c0_31] : memref<1x32xf32, #tpu.memory_space<vmem>>, vector<1x32xf32>
    %80 = vector.shape_cast %79 : vector<1x32xf32> to vector<32xf32>
    %81 = vector.shape_cast %80 : vector<32xf32> to vector<1x32xf32>
    %82 = vector.broadcast %81 : vector<1x32xf32> to vector<8x32xf32>
    %83 = arith.addf %78, %82 : vector<8x32xf32>
    %84 = arith.truncf %83 : vector<8x32xf32> to vector<8x32xbf16>
    %85 = tpu.iota {dimensions = array<i32: 0>} : vector<8x8xi32>
    %86 = vector.broadcast %1 : i32 to vector<8x8xi32>
    %87 = arith.addi %85, %86 : vector<8x8xi32>
    %88 = tpu.iota {dimensions = array<i32: 1>} : vector<8x8xi32>
    %89 = arith.cmpi sle, %88, %87 : vector<8x8xi32>
    %90 = vector.extract_strided_slice %84 {offsets = [0, 0], sizes = [8, 8], strides = [1, 1]} : vector<8x32xbf16> to vector<8x8xbf16>
    %91 = vector.extract_strided_slice %68 {offsets = [0, 0], sizes = [8, 8], strides = [1, 1]} : vector<8x32xbf16> to vector<8x8xbf16>
    %92 = vector.extract_strided_slice %76 {offsets = [0, 0], sizes = [8, 8], strides = [1, 1]} : vector<8x32xbf16> to vector<8x8xbf16>
    %cst_32 = arith.constant dense<0.000000e+00> : vector<8x8xf32>
    %93 = tpu.matmul %90, %91, %cst_32 {dimension_numbers = #tpu.dot_dimension_numbers<[1], [1], [0], [0], [0, 0, 1, 0], [], []>} : vector<8x8xbf16>, vector<8x8xbf16>, vector<8x8xf32> -> vector<8x8xf32>
    %cst_33 = arith.constant 0.353553385 : f32
    %94 = vector.broadcast %cst_33 : f32 to vector<8x8xf32>
    %95 = arith.mulf %93, %94 : vector<8x8xf32>
    %cst_34 = arith.constant -1.000000e+30 : f32
    %96 = vector.broadcast %cst_34 : f32 to vector<8x8xf32>
    %97 = arith.select %89, %95, %96 : vector<8x8xi1>, vector<8x8xf32>
    %cst_35 = arith.constant dense<0xFF800000> : vector<8xf32>
    %98 = vector.multi_reduction <maximumf>, %97, %cst_35 [1] : vector<8x8xf32> to vector<8xf32>
    %99 = vector.shape_cast %98 : vector<8xf32> to vector<8x1xf32>
    %100 = vector.broadcast %99 : vector<8x1xf32> to vector<8x8xf32>
    %101 = arith.subf %97, %100 : vector<8x8xf32>
    %102 = math.exp %101 : vector<8x8xf32>
    %cst_36 = arith.constant dense<0.000000e+00> : vector<8xf32>
    %103 = vector.multi_reduction <add>, %102, %cst_36 [1] : vector<8x8xf32> to vector<8xf32>
    %104 = vector.shape_cast %103 : vector<8xf32> to vector<8x1xf32>
    %105 = tpu.reciprocal %104 {approx = true} : vector<8x1xf32> -> vector<8x1xf32>
    %106 = vector.broadcast %105 : vector<8x1xf32> to vector<8x8xf32>
    %107 = arith.mulf %102, %106 : vector<8x8xf32>
    %108 = arith.truncf %107 : vector<8x8xf32> to vector<8x8xbf16>
    %cst_37 = arith.constant dense<0.000000e+00> : vector<8x8xf32>
    %109 = tpu.matmul %108, %92, %cst_37 {dimension_numbers = #tpu.dot_dimension_numbers<[1], [0], [0], [1], [0, 0, 1, 1], [], []>} : vector<8x8xbf16>, vector<8x8xbf16>, vector<8x8xf32> -> vector<8x8xf32>
    %110 = arith.truncf %109 : vector<8x8xf32> to vector<8x8xbf16>
    %c0_38 = arith.constant 0 : index
    %c0_39 = arith.constant 0 : index
    %111 = vector.load %arg20[%c0_38, %c0_39] : memref<8x32xbf16, #tpu.memory_space<vmem>>, vector<8x8xbf16>
    tpu.vector_store %arg20[%c0_38, %c0_39], %110 {strides = array<i32>} : memref<8x32xbf16, #tpu.memory_space<vmem>>, vector<8x8xbf16>,
    %112 = vector.extract_strided_slice %84 {offsets = [0, 8], sizes = [8, 8], strides = [1, 1]} : vector<8x32xbf16> to vector<8x8xbf16>
    %113 = vector.extract_strided_slice %68 {offsets = [0, 8], sizes = [8, 8], strides = [1, 1]} : vector<8x32xbf16> to vector<8x8xbf16>
    %114 = vector.extract_strided_slice %76 {offsets = [0, 8], sizes = [8, 8], strides = [1, 1]} : vector<8x32xbf16> to vector<8x8xbf16>
    %cst_40 = arith.constant dense<0.000000e+00> : vector<8x8xf32>
    %115 = tpu.matmul %112, %113, %cst_40 {dimension_numbers = #tpu.dot_dimension_numbers<[1], [1], [0], [0], [0, 0, 1, 0], [], []>} : vector<8x8xbf16>, vector<8x8xbf16>, vector<8x8xf32> -> vector<8x8xf32>
    %cst_41 = arith.constant 0.353553385 : f32
    %116 = vector.broadcast %cst_41 : f32 to vector<8x8xf32>
    %117 = arith.mulf %115, %116 : vector<8x8xf32>
    %cst_42 = arith.constant -1.000000e+30 : f32
    %118 = vector.broadcast %cst_42 : f32 to vector<8x8xf32>
    %119 = arith.select %89, %117, %118 : vector<8x8xi1>, vector<8x8xf32>
    %cst_43 = arith.constant dense<0xFF800000> : vector<8xf32>
    %120 = vector.multi_reduction <maximumf>, %119, %cst_43 [1] : vector<8x8xf32> to vector<8xf32>
    %121 = vector.shape_cast %120 : vector<8xf32> to vector<8x1xf32>
    %122 = vector.broadcast %121 : vector<8x1xf32> to vector<8x8xf32>
    %123 = arith.subf %119, %122 : vector<8x8xf32>
    %124 = math.exp %123 : vector<8x8xf32>
    %cst_44 = arith.constant dense<0.000000e+00> : vector<8xf32>
    %125 = vector.multi_reduction <add>, %124, %cst_44 [1] : vector<8x8xf32> to vector<8xf32>
    %126 = vector.shape_cast %125 : vector<8xf32> to vector<8x1xf32>
    %127 = tpu.reciprocal %126 {approx = true} : vector<8x1xf32> -> vector<8x1xf32>
    %128 = vector.broadcast %127 : vector<8x1xf32> to vector<8x8xf32>
    %129 = arith.mulf %124, %128 : vector<8x8xf32>
    %130 = arith.truncf %129 : vector<8x8xf32> to vector<8x8xbf16>
    %cst_45 = arith.constant dense<0.000000e+00> : vector<8x8xf32>
    %131 = tpu.matmul %130, %114, %cst_45 {dimension_numbers = #tpu.dot_dimension_numbers<[1], [0], [0], [1], [0, 0, 1, 1], [], []>} : vector<8x8xbf16>, vector<8x8xbf16>, vector<8x8xf32> -> vector<8x8xf32>
    %132 = arith.truncf %131 : vector<8x8xf32> to vector<8x8xbf16>
    %c0_46 = arith.constant 0 : index
    %c8 = arith.constant 8 : index
    %133 = vector.load %arg20[%c0_46, %c8] : memref<8x32xbf16, #tpu.memory_space<vmem>>, vector<8x8xbf16>
    tpu.vector_store %arg20[%c0_46, %c8], %132 {strides = array<i32>} : memref<8x32xbf16, #tpu.memory_space<vmem>>, vector<8x8xbf16>,
    %134 = vector.extract_strided_slice %84 {offsets = [0, 16], sizes = [8, 8], strides = [1, 1]} : vector<8x32xbf16> to vector<8x8xbf16>
    %135 = vector.extract_strided_slice %68 {offsets = [0, 16], sizes = [8, 8], strides = [1, 1]} : vector<8x32xbf16> to vector<8x8xbf16>
    %136 = vector.extract_strided_slice %76 {offsets = [0, 16], sizes = [8, 8], strides = [1, 1]} : vector<8x32xbf16> to vector<8x8xbf16>
    %cst_47 = arith.constant dense<0.000000e+00> : vector<8x8xf32>
    %137 = tpu.matmul %134, %135, %cst_47 {dimension_numbers = #tpu.dot_dimension_numbers<[1], [1], [0], [0], [0, 0, 1, 0], [], []>} : vector<8x8xbf16>, vector<8x8xbf16>, vector<8x8xf32> -> vector<8x8xf32>
    %cst_48 = arith.constant 0.353553385 : f32
    %138 = vector.broadcast %cst_48 : f32 to vector<8x8xf32>
    %139 = arith.mulf %137, %138 : vector<8x8xf32>
    %cst_49 = arith.constant -1.000000e+30 : f32
    %140 = vector.broadcast %cst_49 : f32 to vector<8x8xf32>
    %141 = arith.select %89, %139, %140 : vector<8x8xi1>, vector<8x8xf32>
    %cst_50 = arith.constant dense<0xFF800000> : vector<8xf32>
    %142 = vector.multi_reduction <maximumf>, %141, %cst_50 [1] : vector<8x8xf32> to vector<8xf32>
    %143 = vector.shape_cast %142 : vector<8xf32> to vector<8x1xf32>
    %144 = vector.broadcast %143 : vector<8x1xf32> to vector<8x8xf32>
    %145 = arith.subf %141, %144 : vector<8x8xf32>
    %146 = math.exp %145 : vector<8x8xf32>
    %cst_51 = arith.constant dense<0.000000e+00> : vector<8xf32>
    %147 = vector.multi_reduction <add>, %146, %cst_51 [1] : vector<8x8xf32> to vector<8xf32>
    %148 = vector.shape_cast %147 : vector<8xf32> to vector<8x1xf32>
    %149 = tpu.reciprocal %148 {approx = true} : vector<8x1xf32> -> vector<8x1xf32>
    %150 = vector.broadcast %149 : vector<8x1xf32> to vector<8x8xf32>
    %151 = arith.mulf %146, %150 : vector<8x8xf32>
    %152 = arith.truncf %151 : vector<8x8xf32> to vector<8x8xbf16>
    %cst_52 = arith.constant dense<0.000000e+00> : vector<8x8xf32>
    %153 = tpu.matmul %152, %136, %cst_52 {dimension_numbers = #tpu.dot_dimension_numbers<[1], [0], [0], [1], [0, 0, 1, 1], [], []>} : vector<8x8xbf16>, vector<8x8xbf16>, vector<8x8xf32> -> vector<8x8xf32>
    %154 = arith.truncf %153 : vector<8x8xf32> to vector<8x8xbf16>
    %c0_53 = arith.constant 0 : index
    %c16 = arith.constant 16 : index
    %155 = vector.load %arg20[%c0_53, %c16] : memref<8x32xbf16, #tpu.memory_space<vmem>>, vector<8x8xbf16>
    tpu.vector_store %arg20[%c0_53, %c16], %154 {strides = array<i32>} : memref<8x32xbf16, #tpu.memory_space<vmem>>, vector<8x8xbf16>,
    %156 = vector.extract_strided_slice %84 {offsets = [0, 24], sizes = [8, 8], strides = [1, 1]} : vector<8x32xbf16> to vector<8x8xbf16>
    %157 = vector.extract_strided_slice %68 {offsets = [0, 24], sizes = [8, 8], strides = [1, 1]} : vector<8x32xbf16> to vector<8x8xbf16>
    %158 = vector.extract_strided_slice %76 {offsets = [0, 24], sizes = [8, 8], strides = [1, 1]} : vector<8x32xbf16> to vector<8x8xbf16>
    %cst_54 = arith.constant dense<0.000000e+00> : vector<8x8xf32>
    %159 = tpu.matmul %156, %157, %cst_54 {dimension_numbers = #tpu.dot_dimension_numbers<[1], [1], [0], [0], [0, 0, 1, 0], [], []>} : vector<8x8xbf16>, vector<8x8xbf16>, vector<8x8xf32> -> vector<8x8xf32>
    %cst_55 = arith.constant 0.353553385 : f32
    %160 = vector.broadcast %cst_55 : f32 to vector<8x8xf32>
    %161 = arith.mulf %159, %160 : vector<8x8xf32>
    %cst_56 = arith.constant -1.000000e+30 : f32
    %162 = vector.broadcast %cst_56 : f32 to vector<8x8xf32>
    %163 = arith.select %89, %161, %162 : vector<8x8xi1>, vector<8x8xf32>
    %cst_57 = arith.constant dense<0xFF800000> : vector<8xf32>
    %164 = vector.multi_reduction <maximumf>, %163, %cst_57 [1] : vector<8x8xf32> to vector<8xf32>
    %165 = vector.shape_cast %164 : vector<8xf32> to vector<8x1xf32>
    %166 = vector.broadcast %165 : vector<8x1xf32> to vector<8x8xf32>
    %167 = arith.subf %163, %166 : vector<8x8xf32>
    %168 = math.exp %167 : vector<8x8xf32>
    %cst_58 = arith.constant dense<0.000000e+00> : vector<8xf32>
    %169 = vector.multi_reduction <add>, %168, %cst_58 [1] : vector<8x8xf32> to vector<8xf32>
    %170 = vector.shape_cast %169 : vector<8xf32> to vector<8x1xf32>
    %171 = tpu.reciprocal %170 {approx = true} : vector<8x1xf32> -> vector<8x1xf32>
    %172 = vector.broadcast %171 : vector<8x1xf32> to vector<8x8xf32>
    %173 = arith.mulf %168, %172 : vector<8x8xf32>
    %174 = arith.truncf %173 : vector<8x8xf32> to vector<8x8xbf16>
    %cst_59 = arith.constant dense<0.000000e+00> : vector<8x8xf32>
    %175 = tpu.matmul %174, %158, %cst_59 {dimension_numbers = #tpu.dot_dimension_numbers<[1], [0], [0], [1], [0, 0, 1, 1], [], []>} : vector<8x8xbf16>, vector<8x8xbf16>, vector<8x8xf32> -> vector<8x8xf32>
    %176 = arith.truncf %175 : vector<8x8xf32> to vector<8x8xbf16>
    %c0_60 = arith.constant 0 : index
    %c24 = arith.constant 24 : index
    %177 = vector.load %arg20[%c0_60, %c24] : memref<8x32xbf16, #tpu.memory_space<vmem>>, vector<8x8xbf16>
    tpu.vector_store %arg20[%c0_60, %c24], %176 {strides = array<i32>} : memref<8x32xbf16, #tpu.memory_space<vmem>>, vector<8x8xbf16>,
    %c0_61 = arith.constant 0 : index
    %c0_62 = arith.constant 0 : index
    %178 = vector.load %arg20[%c0_61, %c0_62] : memref<8x32xbf16, #tpu.memory_space<vmem>>, vector<8x32xbf16>
    %c0_63 = arith.constant 0 : index
    %c0_64 = arith.constant 0 : index
    %179 = vector.load %arg11[%c0_63, %c0_64] : memref<32x32xbf16, #tpu.memory_space<vmem>>, vector<32x32xbf16>
    %cst_65 = arith.constant dense<0.000000e+00> : vector<8x32xf32>
    %180 = tpu.matmul %178, %179, %cst_65 {dimension_numbers = #tpu.dot_dimension_numbers<[1], [0], [0], [1], [0, 0, 1, 1], [], []>} : vector<8x32xbf16>, vector<32x32xbf16>, vector<8x32xf32> -> vector<8x32xf32>
    %c0_66 = arith.constant 0 : index
    %c0_67 = arith.constant 0 : index
    %181 = vector.load %arg12[%c0_66, %c0_67] : memref<1x32xf32, #tpu.memory_space<vmem>>, vector<1x32xf32>
    %182 = vector.shape_cast %181 : vector<1x32xf32> to vector<32xf32>
    %183 = vector.shape_cast %182 : vector<32xf32> to vector<1x32xf32>
    %184 = vector.broadcast %183 : vector<1x32xf32> to vector<8x32xf32>
    %185 = arith.addf %180, %184 : vector<8x32xf32>
    %186 = arith.addf %6, %185 : vector<8x32xf32>
    %c0_68 = arith.constant 0 : index
    %c0_69 = arith.constant 0 : index
    %187 = vector.load %arg13[%c0_68, %c0_69] : memref<1x32xf32, #tpu.memory_space<vmem>>, vector<1x32xf32>
    %188 = vector.shape_cast %187 : vector<1x32xf32> to vector<32xf32>
    %c0_70 = arith.constant 0 : index
    %c0_71 = arith.constant 0 : index
    %189 = vector.load %arg14[%c0_70, %c0_71] : memref<1x32xf32, #tpu.memory_space<vmem>>, vector<1x32xf32>
    %190 = vector.shape_cast %189 : vector<1x32xf32> to vector<32xf32>
    %cst_72 = arith.constant dense<0.000000e+00> : vector<8xf32>
    %191 = vector.multi_reduction <add>, %186, %cst_72 [1] : vector<8x32xf32> to vector<8xf32>
    %192 = vector.shape_cast %191 : vector<8xf32> to vector<8x1xf32>
    %cst_73 = arith.constant 3.200000e+01 : f32
    %193 = vector.broadcast %cst_73 : f32 to vector<8x1xf32>
    %194 = arith.divf %192, %193 : vector<8x1xf32>
    %195 = vector.broadcast %194 : vector<8x1xf32> to vector<8x32xf32>
    %196 = arith.subf %186, %195 : vector<8x32xf32>
    %197 = arith.mulf %196, %196 : vector<8x32xf32>
    %cst_74 = arith.constant dense<0.000000e+00> : vector<8xf32>
    %198 = vector.multi_reduction <add>, %197, %cst_74 [1] : vector<8x32xf32> to vector<8xf32>
    %199 = vector.shape_cast %198 : vector<8xf32> to vector<8x1xf32>
    %cst_75 = arith.constant 3.200000e+01 : f32
    %200 = vector.broadcast %cst_75 : f32 to vector<8x1xf32>
    %201 = arith.divf %199, %200 : vector<8x1xf32>
    %202 = vector.broadcast %194 : vector<8x1xf32> to vector<8x32xf32>
    %203 = arith.subf %186, %202 : vector<8x32xf32>
    %cst_76 = arith.constant 9.99999974E-6 : f32
    %204 = vector.broadcast %cst_76 : f32 to vector<8x1xf32>
    %205 = arith.addf %201, %204 : vector<8x1xf32>
    %206 = math.rsqrt %205 : vector<8x1xf32>
    %207 = vector.broadcast %206 : vector<8x1xf32> to vector<8x32xf32>
    %208 = arith.mulf %203, %207 : vector<8x32xf32>
    %209 = vector.shape_cast %188 : vector<32xf32> to vector<1x32xf32>
    %210 = vector.broadcast %209 : vector<1x32xf32> to vector<8x32xf32>
    %211 = arith.mulf %208, %210 : vector<8x32xf32>
    %212 = vector.shape_cast %190 : vector<32xf32> to vector<1x32xf32>
    %213 = vector.broadcast %212 : vector<1x32xf32> to vector<8x32xf32>
    %214 = arith.addf %211, %213 : vector<8x32xf32>
    %215 = arith.truncf %214 : vector<8x32xf32> to vector<8x32xbf16>
    %c0_77 = arith.constant 0 : index
    %c0_78 = arith.constant 0 : index
    %216 = vector.load %arg15[%c0_77, %c0_78] : memref<32x128xbf16, #tpu.memory_space<vmem>>, vector<32x128xbf16>
    %cst_79 = arith.constant dense<0.000000e+00> : vector<8x128xf32>
    %217 = tpu.matmul %215, %216, %cst_79 {dimension_numbers = #tpu.dot_dimension_numbers<[1], [0], [0], [1], [0, 0, 1, 1], [], []>} : vector<8x32xbf16>, vector<32x128xbf16>, vector<8x128xf32> -> vector<8x128xf32>
    %c0_80 = arith.constant 0 : index
    %c0_81 = arith.constant 0 : index
    %218 = vector.load %arg16[%c0_80, %c0_81] : memref<1x128xf32, #tpu.memory_space<vmem>>, vector<1x128xf32>
    %219 = vector.shape_cast %218 : vector<1x128xf32> to vector<128xf32>
    %220 = vector.shape_cast %219 : vector<128xf32> to vector<1x128xf32>
    %221 = vector.broadcast %220 : vector<1x128xf32> to vector<8x128xf32>
    %222 = arith.addf %217, %221 : vector<8x128xf32>
    %cst_82 = arith.constant 5.000000e-01 : f32
    %223 = vector.broadcast %cst_82 : f32 to vector<8x128xf32>
    %224 = arith.mulf %223, %222 : vector<8x128xf32>
    %cst_83 = arith.constant 4.471500e-02 : f32
    %225 = vector.broadcast %cst_83 : f32 to vector<8x128xf32>
    %226 = arith.mulf %225, %222 : vector<8x128xf32>
    %227 = arith.mulf %226, %222 : vector<8x128xf32>
    %228 = arith.mulf %227, %222 : vector<8x128xf32>
    %229 = arith.addf %222, %228 : vector<8x128xf32>
    %cst_84 = arith.constant 0.797884583 : f32
    %230 = vector.broadcast %cst_84 : f32 to vector<8x128xf32>
    %231 = arith.mulf %230, %229 : vector<8x128xf32>
    %232 = math.tanh %231 : vector<8x128xf32>
    %cst_85 = arith.constant 1.000000e+00 : f32
    %233 = vector.broadcast %cst_85 : f32 to vector<8x128xf32>
    %234 = arith.addf %233, %232 : vector<8x128xf32>
    %235 = arith.mulf %224, %234 : vector<8x128xf32>
    %236 = arith.truncf %235 : vector<8x128xf32> to vector<8x128xbf16>
    %c0_86 = arith.constant 0 : index
    %c0_87 = arith.constant 0 : index
    %237 = vector.load %arg17[%c0_86, %c0_87] : memref<128x32xbf16, #tpu.memory_space<vmem>>, vector<128x32xbf16>
    %cst_88 = arith.constant dense<0.000000e+00> : vector<8x32xf32>
    %238 = tpu.matmul %236, %237, %cst_88 {dimension_numbers = #tpu.dot_dimension_numbers<[1], [0], [0], [1], [0, 0, 1, 1], [], []>} : vector<8x128xbf16>, vector<128x32xbf16>, vector<8x32xf32> -> vector<8x32xf32>
    %239 = arith.addf %186, %238 : vector<8x32xf32>
    %c0_89 = arith.constant 0 : index
    %c0_90 = arith.constant 0 : index
    %240 = vector.load %arg18[%c0_89, %c0_90] : memref<1x32xf32, #tpu.memory_space<vmem>>, vector<1x32xf32>
    %241 = vector.shape_cast %240 : vector<1x32xf32> to vector<32xf32>
    %242 = vector.shape_cast %241 : vector<32xf32> to vector<1x32xf32>
    %243 = vector.broadcast %242 : vector<1x32xf32> to vector<8x32xf32>
    %244 = arith.addf %239, %243 : vector<8x32xf32>
    %c0_91 = arith.constant 0 : index
    %c0_92 = arith.constant 0 : index
    %c0_93 = arith.constant 0 : index
    %245 = vector.load %arg19[%c0_91, %c0_92, %c0_93] : memref<1x8x32xf32, #tpu.memory_space<vmem>>, vector<1x8x32xf32>
    %246 = vector.shape_cast %245 : vector<1x8x32xf32> to vector<8x32xf32>
    %247 = vector.shape_cast %244 : vector<8x32xf32> to vector<1x8x32xf32>
    tpu.vector_store %arg19[%c0_91, %c0_92, %c0_93], %247 {strides = array<i32>} : memref<1x8x32xf32, #tpu.memory_space<vmem>>, vector<1x8x32xf32>,
    return
  }
  func.func @transform_0(%arg0: i32, %arg1: i32) -> (i32, i32, i32) {
    %c0_i32 = arith.constant 0 : i32
    %c0_i32_0 = arith.constant 0 : i32
    %c0_i32_1 = arith.constant 0 : i32
    return %arg0, %c0_i32, %c0_i32_0 : i32, i32, i32
  }
  func.func @transform_1(%arg0: i32, %arg1: i32) -> (i32, i32) {
    %c0_i32 = arith.constant 0 : i32
    %c0_i32_0 = arith.constant 0 : i32
    %c0_i32_1 = arith.constant 0 : i32
    return %c0_i32, %c0_i32_0 : i32, i32
  }
  func.func @transform_2(%arg0: i32, %arg1: i32) -> (i32, i32) {
    %c0_i32 = arith.constant 0 : i32
    %c0_i32_0 = arith.constant 0 : i32
    %c0_i32_1 = arith.constant 0 : i32
    return %c0_i32, %c0_i32_0 : i32, i32
  }
  func.func @transform_3(%arg0: i32, %arg1: i32) -> (i32, i32) {
    %c0_i32 = arith.constant 0 : i32
    %c0_i32_0 = arith.constant 0 : i32
    %c0_i32_1 = arith.constant 0 : i32
    return %c0_i32, %c0_i32_0 : i32, i32
  }
  func.func @transform_4(%arg0: i32, %arg1: i32) -> (i32, i32) {
    %c0_i32 = arith.constant 0 : i32
    %c0_i32_0 = arith.constant 0 : i32
    %c0_i32_1 = arith.constant 0 : i32
    return %c0_i32, %c0_i32_0 : i32, i32
  }
  func.func @transform_5(%arg0: i32, %arg1: i32) -> (i32, i32) {
    %c0_i32 = arith.constant 0 : i32
    %c0_i32_0 = arith.constant 0 : i32
    %c0_i32_1 = arith.constant 0 : i32
    return %c0_i32, %c0_i32_0 : i32, i32
  }
  func.func @transform_6(%arg0: i32, %arg1: i32) -> (i32, i32) {
    %c0_i32 = arith.constant 0 : i32
    %c0_i32_0 = arith.constant 0 : i32
    %c0_i32_1 = arith.constant 0 : i32
    return %c0_i32, %c0_i32_0 : i32, i32
  }
  func.func @transform_7(%arg0: i32, %arg1: i32) -> (i32, i32) {
    %c0_i32 = arith.constant 0 : i32
    %c0_i32_0 = arith.constant 0 : i32
    %c0_i32_1 = arith.constant 0 : i32
    return %c0_i32, %c0_i32_0 : i32, i32
  }
  func.func @transform_8(%arg0: i32, %arg1: i32) -> (i32, i32) {
    %c0_i32 = arith.constant 0 : i32
    %c0_i32_0 = arith.constant 0 : i32
    %c0_i32_1 = arith.constant 0 : i32
    return %c0_i32, %c0_i32_0 : i32, i32
  }
  func.func @transform_9(%arg0: i32, %arg1: i32) -> (i32, i32) {
    %c0_i32 = arith.constant 0 : i32
    %c0_i32_0 = arith.constant 0 : i32
    %c0_i32_1 = arith.constant 0 : i32
    return %c0_i32, %c0_i32_0 : i32, i32
  }
  func.func @transform_10(%arg0: i32, %arg1: i32) -> (i32, i32) {
    %c0_i32 = arith.constant 0 : i32
    %c0_i32_0 = arith.constant 0 : i32
    %c0_i32_1 = arith.constant 0 : i32
    return %c0_i32, %c0_i32_0 : i32, i32
  }
  func.func @transform_11(%arg0: i32, %arg1: i32) -> (i32, i32) {
    %c0_i32 = arith.constant 0 : i32
    %c0_i32_0 = arith.constant 0 : i32
    %c0_i32_1 = arith.constant 0 : i32
    return %c0_i32, %c0_i32_0 : i32, i32
  }
  func.func @transform_12(%arg0: i32, %arg1: i32) -> (i32, i32) {
    %c0_i32 = arith.constant 0 : i32
    %c0_i32_0 = arith.constant 0 : i32
    %c0_i32_1 = arith.constant 0 : i32
    return %c0_i32, %c0_i32_0 : i32, i32
  }
  func.func @transform_13(%arg0: i32, %arg1: i32) -> (i32, i32) {
    %c0_i32 = arith.constant 0 : i32
    %c0_i32_0 = arith.constant 0 : i32
    %c0_i32_1 = arith.constant 0 : i32
    return %c0_i32, %c0_i32_0 : i32, i32
  }
  func.func @transform_14(%arg0: i32, %arg1: i32) -> (i32, i32) {
    %c0_i32 = arith.constant 0 : i32
    %c0_i32_0 = arith.constant 0 : i32
    %c0_i32_1 = arith.constant 0 : i32
    return %c0_i32, %c0_i32_0 : i32, i32
  }
  func.func @transform_15(%arg0: i32, %arg1: i32) -> (i32, i32) {
    %c0_i32 = arith.constant 0 : i32
    %c0_i32_0 = arith.constant 0 : i32
    %c0_i32_1 = arith.constant 0 : i32
    return %c0_i32, %c0_i32_0 : i32, i32
  }
  func.func @transform_16(%arg0: i32, %arg1: i32) -> (i32, i32) {
    %c0_i32 = arith.constant 0 : i32
    %c0_i32_0 = arith.constant 0 : i32
    %c0_i32_1 = arith.constant 0 : i32
    return %c0_i32, %c0_i32_0 : i32, i32
  }
  func.func @transform_17(%arg0: i32, %arg1: i32) -> (i32, i32, i32) {
    %c0_i32 = arith.constant 0 : i32
    %c0_i32_0 = arith.constant 0 : i32
    return %arg0, %arg1, %c0_i32 : i32, i32, i32
  }
}

</mosaic_0001>

<bundles_post_ra>
// kernel: tpu_custom_call.1
= control target key start
LH: loop header
LB: loop body
LE: loop exit
PB: predicated region body
PF: predicated region fallthrough
CT: control target
= control target key end

     0   :  { %s2757_s0 = inlined_call_operand.vmem [shape: f32[2,8,32], index: 0, kind: input, shape index: {}]   ;;  %s2758_s1 = inlined_call_operand.vmem [shape: f32[1,32], index: 1, kind: input, shape index: {}]   ;;  %s2759_s2 = inlined_call_operand.vmem [shape: f32[1,32], index: 2, kind: input, shape index: {}]   ;;  %s2760_s3 = inlined_call_operand.vmem [shape: bf16[32,32], index: 3, kind: input, shape index: {}]   ;;  %s2761_s4 = inlined_call_operand.vmem [shape: bf16[32,32], index: 4, kind: input, shape index: {}]   ;;  %s2762_s5 = inlined_call_operand.vmem [shape: bf16[32,32], index: 5, kind: input, shape index: {}]   ;;  %s2763_s6 = inlined_call_operand.hbm [shape: f32[1,32], index: 6, kind: input, shape index: {}]   ;;  %s2764_s7 = inlined_call_operand.hbm [shape: f32[1,32], index: 7, kind: input, shape index: {}]   ;;  %s2765_s8 = inlined_call_operand.hbm [shape: f32[1,32], index: 8, kind: input, shape index: {}]   ;;  %s2766_s9 = inlined_call_operand.vmem [shape: bf16[32,32], index: 9, kind: input, shape index: {}]   ;;  %s2767_s10 = inlined_call_operand.vmem [shape: f32[1,32], index: 10, kind: input, shape index: {}]   ;;  %s2768_s11 = inlined_call_operand.vmem [shape: f32[1,32], index: 11, kind: input, shape index: {}]   ;;  %s2769_s12 = inlined_call_operand.vmem [shape: f32[1,32], index: 12, kind: input, shape index: {}]   ;;  %s2770_s13 = inlined_call_operand.vmem [shape: bf16[32,128], index: 13, kind: input, shape index: {}]   ;;  %s2771_s14 = inlined_call_operand.vmem [shape: f32[1,128], index: 14, kind: input, shape index: {}]   ;;  %s2772_s15 = inlined_call_operand.vmem [shape: bf16[128,32], index: 15, kind: input, shape index: {}]   ;;  %s2773_s16 = inlined_call_operand.vmem [shape: f32[1,32], index: 16, kind: input, shape index: {}]   ;;  %s2774_s17 = inlined_call_operand.hbm [shape: f32[2,8,32], index: 17, kind: output, shape index: {}]  }
   0x1   :  { %2789 = sst [smem:[#allocation21_spill]] %s2757_s0 }
   0x2   :  { %2790 = sst [smem:[#allocation22_spill]] %s2758_s1 }
   0x3   :  { %2791 = sst [smem:[#allocation23_spill]] %s2764_s7 }
   0x4   :  { %2792 = sst [smem:[#allocation24_spill]] %s2773_s16 }
   0x5   :  { %2793 = sst [smem:[#allocation25_spill]] %s2774_s17 }
   0x6   :  { %22 = vsyncpa [#allocation4], 0 }
   0x7   :  { %23 = vsyncpa [#allocation7], 0 }
   0x8   :  { %24 = vsyncpa [#allocation5], 0 }
   0x9   :  { %26 = vsyncpa [#allocation5 + $0x1], 0  ;;  %s2357_s24 = smov 0   ;;  %s2359_s25 = smov 0  }
   0xa   :  { %s2361_s26 = smov 0   ;;  %s2363_s27 = smov 0  }
   0xb   :  { %s2365_s28 = smov 0   ;;  %s2367_s29 = smov 0  }
   0xc LB: > { %2794 = sst [smem:[#allocation13_spill]] %s2233_s24  ;;  %s1735_s0 = sadd.s32 4294967295, %s2253_s29   ;;  %s2253_s29 = sphi %s2367_s29, %s32_s29   ;;  %s2249_s28 = sphi %s2365_s28, %s2824_s28   ;;  %s2245_s27 = sphi %s2363_s27, %s2823_s27   ;;  %s2241_s26 = sphi %s2361_s26, %s2822_s26   ;;  %s2237_s25 = sphi %s2359_s25, %s2826_s25   ;;  %s2233_s24 = sphi %s2357_s24, %s2825_s24  }
   0xd   : > { %2795 = sst [smem:[#allocation14_spill]] %s2241_s26  ;;  %s1736_s30 = sadd.s32 4294967294, %s2253_s29  }
   0xe   : > { %2796 = sst [smem:[#allocation15_spill]] %s2249_s28  ;;  %s44_s18 = sadd.s32 1, %s2249_s28 }
   0xf   : > { %2797 = sst [smem:[#allocation16_spill]] %s2253_s29  ;;  %s415_s19 = sadd.s32 1, %s2241_s26 }
  0x10   : > { %p46_p0 = scmp.ge.s32.totalorder %s44_s18, 2  ;;  %p425_p1 = scmp.ne.s32.totalorder %s2241_s26, %s2237_s25 }
  0x11   : > { %p426_p2 = scmp.eq.s32.totalorder %s1735_s0, 1  ;;  %p431_p3 = scmp.ne.s32.totalorder %s2237_s25, %s2233_s24 }
  0x12   : > { %s2828_s18 = smov (%p46_p0, %s44_s18), 0  ;;  %p432_p5 = scmp.eq.s32.totalorder %s1736_s30, 1 }
  0x13   : > { %2798 = sst [smem:[#allocation17_spill]] %s2828_s18  ;;  %p2397_p4 = por %p426_p2, %p425_p1 }
  0x14   : > { %s410_s20 = ssub.s32 %s2249_s28, %s2828_s18  ;;  %p1737_p6 = scmp.ge.s32.totalorder %s2253_s29, 1 }
  0x15   : > { %s2799_s1 = scalar_select %p2397_p4, 1, 0 }
  0x16   : > { %p413_p7 = scmp.eq.s32.totalorder %s410_s20, 0  ;;  %p2404_p8 = por %p432_p5, %p431_p3 }
  0x17   : > { %2800 = sst [smem:[#allocation18_spill]] %s2799_s1  ;;  %p439_p9 = scmp.lt.s32.totalorder %s2253_s29, 3 }
  0x18   : > { %s2801_s21 = scalar_select %p2404_p8, 1, 0 }
  0x19   : > { %s2410_s22 = scalar_select %p413_p7, %s2241_s26, %s415_s19  }
  0x1a   : > { %2802 = sst [smem:[#allocation19_spill]] %s2801_s21  ;;  %p2412_p10 = pnand %p1737_p6, %p439_p9 }
  0x1b   : > { %2803 = sst [smem:[#allocation20_spill]] %s2410_s22  ;;  %p2416_p11 = scmp.eq.s32.totalorder %s1735_s0, 0 }
  0x1c   : > { %s2804_s23 = scalar_select %p2412_p10, 1, 0 }
  0x1d   : > { %s2805_s24 = scalar_select %p2416_p11, 1, 0 }
  0x1e   : > { %p1961_p12 = pneg %p2412_p10  ;;  %s2255_s30 = smov [#allocation6]  }
  0x1f   : > { %s478_s20 = sshll.u32 %s2255_s30, 4  ;;  %s2256_s19 = smov [#allocation3]   ;;  %s479_s20 = int_to_ptr.vmem [resolvable:$true] %s478_s20 }
  0x20   : > { %p2424_p13 = pnand %p2416_p11, %p1961_p12  ;;  %s467_s28 = sshll.u32 %s2256_s19, 4  ;;  %s2428_s28 = int_to_ptr.vmem [resolvable:$true] %s467_s28 }
  0x21   : > { %s2807_s7 = sld [smem:[#allocation23_spill]] }
  0x22   : > { %p2438_p1 = pneg %p2424_p13 }
  0x27   : > { %s2083_s26 = scalar_lea.hbm %s2807_s7, 16 }
  0x28   : > { %p2084_p0 = scmp.ne.s32.totalorder %s2807_s7, %s2083_s26  ;;  %p2090_p5 = scmp.lt.u32.totalorder %s2083_s26, %s2807_s7 }
  0x2a   : > { %p2086_p2 = pnand %p2438_p1, %p2084_p0 }
  0x2c   : > { %p2087_p3 = pneg %p2086_p2 }
  0x2e   : > { %p2092_p6 = pnand %p2090_p5, %p2087_p3 }
  0x30   : > { %2095 = shalt.err (!%p2092_p6)
}
  0x31   : > { %s2096_s22 = scalar_lea.vmem %s479_s20, 16  ;;  %s2103_s29 = scalar_lea.vmem %s479_s20, 32 }
  0x32   : > { %p2097_p7 = scmp.ne.s32.totalorder %s479_s20, %s2096_s22  ;;  %p2104_p8 = scmp.lt.s32.totalorder %s479_s20, %s479_s20 }
  0x33   : > { %p2105_p4 = scmp.lt.s32.totalorder %s2103_s29, %s2096_s22 }
  0x34   : > { %p2099_p9 = pnand %p2097_p7, %p2438_p1 }
  0x35   : > { %p2106_p11 = por %p2105_p4, %p2104_p8 }
  0x36   : > { %p2100_p12 = pneg %p2099_p9 }
  0x38   : > { %p2107_p10 = pnand %p2106_p11, %p2100_p12 }
  0x3a   : > { %2110 = shalt.err (!%p2107_p10)
}
  0x3b   : > { %1967 = dma.hbm_to_vmem [thread:$0]  (!%p2424_p13), %s2807_s7, 16, %s479_s20, [#allocation7]  }
  0x3c   : > { %s2111_s19 = scalar_lea.hbm %s2763_s6, 16 }
  0x3d   : > { %p2112_p0 = scmp.ne.s32.totalorder %s2763_s6, %s2111_s19  ;;  %p2118_p8 = scmp.lt.u32.totalorder %s2111_s19, %s2763_s6 }
  0x3f   : > { %p2114_p2 = pnand %p2112_p0, %p2438_p1 }
  0x41   : > { %p2115_p4 = pneg %p2114_p2 }
  0x43   : > { %p2120_p10 = pnand %p2118_p8, %p2115_p4 }
  0x45   : > { %2123 = shalt.err (!%p2120_p10)
}
  0x46   : > { %s2124_s20 = scalar_lea.vmem %s2428_s28, 16  ;;  %s2131_s16 = scalar_lea.vmem %s2428_s28, 32 }
  0x47   : > { %p2125_p11 = scmp.ne.s32.totalorder %s2428_s28, %s2124_s20  ;;  %p2132_p6 = scmp.lt.s32.totalorder %s2428_s28, %s2428_s28 }
  0x48   : > { %p2133_p7 = scmp.lt.s32.totalorder %s2131_s16, %s2124_s20 }
  0x49   : > { %p2127_p3 = pnand %p2125_p11, %p2438_p1 }
  0x4a   : > { %p2134_p9 = por %p2133_p7, %p2132_p6 }
  0x4b   : > { %p2128_p5 = pneg %p2127_p3 }
  0x4d   : > { %p2135_p12 = pnand %p2134_p9, %p2128_p5 }
  0x4f   : > { %2138 = shalt.err (!%p2135_p12)
}
  0x50   : > { %1964 = dma.hbm_to_vmem [thread:$0]  (!%p2424_p13), %s2763_s6, 16, %s2428_s28, [#allocation4]  }
  0x51   : > { %s2257_s0 = smov [#allocation8]   ;;  %s2139_s22 = scalar_lea.hbm %s2765_s8, 16 }
  0x52   : > { %s489_s17 = sshll.u32 %s2257_s0, 4  ;;  %p2140_p0 = scmp.ne.s32.totalorder %s2765_s8, %s2139_s22  ;;  %s490_s17 = int_to_ptr.vmem [resolvable:$true] %s489_s17 }
  0x53   : > { %p2146_p8 = scmp.lt.u32.totalorder %s2139_s22, %s2765_s8 }
  0x54   : > { %p2142_p2 = pnand %p2140_p0, %p2438_p1 }
  0x56   : > { %p2143_p4 = pneg %p2142_p2 }
  0x58   : > { %p2148_p10 = pnand %p2146_p8, %p2143_p4 }
  0x5a   : > { %2151 = shalt.err (!%p2148_p10)
}
  0x5b   : > { %s2152_s28 = scalar_lea.vmem %s490_s17, 16  ;;  %s2159_s1 = scalar_lea.vmem %s490_s17, 32 }
  0x5c   : > { %p2153_p11 = scmp.ne.s32.totalorder %s490_s17, %s2152_s28  ;;  %p2160_p6 = scmp.lt.s32.totalorder %s490_s17, %s490_s17 }
  0x5d   : > { %p2161_p7 = scmp.lt.s32.totalorder %s2159_s1, %s2152_s28 }
  0x5e   : > { %p2155_p3 = pnand %p2153_p11, %p2438_p1 }
  0x5f   : > { %p2162_p9 = por %p2161_p7, %p2160_p6 }
  0x60   : > { %p2156_p5 = pneg %p2155_p3 }
  0x62   : > { %p2163_p12 = pnand %p2162_p9, %p2156_p5 }
  0x64   : > { %2166 = shalt.err (!%p2163_p12)
}
  0x65   : > { %1970 = dma.hbm_to_vmem [thread:$0]  (!%p2424_p13), %s2765_s8, 16, %s490_s17, [#allocation7]  }
  0x66   : > { %p2809_p0 = scmp.ne.s32.totalorder %s2804_s23, 0 }
  0x67   : > { %p2810_p2 = scmp.ne.s32.totalorder (!%p2809_p0), %s2805_s24, 0 }
  0x68   : > { %533 = sbr.rel (%p2809_p0) target bundleno = 2707 (0xa93), region = 88 }
  0x6f   : > { %2220 = dma.done.wait (%p2810_p2), [#allocation4], 16  }
  0x70   : > { %2222 = vsyncadd (%p2810_p2), [#allocation4], 4294967280 }
  0x71   : > { %2224 = dma.done.wait (%p2810_p2), [#allocation7], 32  }
  0x72   : > { %2226 = vsyncadd (%p2810_p2), [#allocation7], 4294967264  ;;  %p592_p1 = scmp.lt.s32.totalorder %s2245_s27, 1  ;;  %s2811_s17 = sld [smem:[#allocation21_spill]]  ;;  %vm603_vm0 = vcmask 261120   ;;  %v2041_v12 = vld [vmem:[%s2761_s4] sm:$0xff]  }
  0x73   : > { %v2258_v13 = vmov 0.0   ;;  %v2042_v14 = vld [vmem:[%s2761_s4 + $0x8] sm:$0xff]   ;;  %vm2259_vm1 = vmmov 0   ;;  %s2812_s28 = sld [smem:[#allocation22_spill]]  ;;  %v1749_v24 = vld [vmem:[%s2759_s2] ss:$0 sm:$0xff] }
  0x74   : > { %s593_s7 = scalar_select %p592_p1, %s2245_s27, 1  ;;  %1839 = vmatprep.subr.bf16.mxu0 %v2258_v13  ;;  %1863 = vmatprep.subr.bf16.mxu1 %v2258_v13  ;;  %v2043_v27 = vld [vmem:[%s2762_s5] sm:$0xff]   ;;  %v2044_v30 = vld [vmem:[%s2762_s5 + $0x8] sm:$0xff]   ;;  %vm854_vm2 = vcmask 64512   ;;  %vm918_vm3 = vcmask 1043456   ;;  %vm963_vm5 = vcmask 60416  }
  0x75   : > { %1840 = vmatpush3.bf16.msra.mxu0 %v2041_v12  ;;  %1843 = vmatprep.mubr.msk.bf16.mxu0 %vm2259_vm1, %v2258_v13  ;;  %v2045_v32 = vld [vmem:[%s2760_s3] sm:$0xff]   ;;  %v2046_v34 = vld [vmem:[%s2760_s3 + $0x8] sm:$0xff]   ;;  %s2260_s19 = smov 120   ;;  %s2261_s22 = smov 104   ;;  %vm1087_vm6 = vcmask 126016   ;;  %vm1208_vm7 = vcmask 191616  }
  0x76   : > { %s1747_s18 = sshll.u32 %s593_s7, 3  ;;  %1841 = vmatprep.subr.bf16.mxu0 %v2258_v13  ;;  %1865 = vmatprep.mubr.msk.bf16.mxu1 %vm2259_vm1, %v2258_v13  ;;  %v1750_v37 = vld [vmem:[#allocation6] ss:$0 sm:$0xff]  ;;  %v1754_v45 = vld [vmem:[#allocation8] ss:$0 sm:$0xff]  ;;  %s2262_s29 = smov 112  }
  0x77   : > { %v1758_v53 = vld [vmem:[#allocation3] ss:$0 sm:$0xff]  ;;  %s2263_s20 = smov 8   ;;  %s2264_s16 = smov 16   ;;  %vm1329_vm8 = vcmask 257216  }
  0x78   : > { %s595_s26 = scalar_lea.vmem %s2811_s17, %s1747_s18  ;;  %s2265_s7 = smov 24  }
  0x79   : > { %v2511_v0 = vld [vmem:[%s595_s26] sm:$0xff]  ;;  %1842 = vmatpush3.bf16.msra.mxu0 %v2042_v14  ;;  %s589_s1 = sand.u32 1, %s2237_s25   ;;  %s2813_s18 = sld [smem:[#allocation24_spill]] }
  0x7a   : > { %v604_v1 = vsel %vm603_vm0, %v2511_v0, 0.0  ;;  %1847 = vmatprep.subr.bf16.mxu0 %v2258_v13  ;;  %v1748_v22 = vld [vmem:[%s2812_s28] ss:$0 sm:$0xff]  ;;  %s1746_s21 = sshll.u32 %s589_s1, 3  ;;  %s2814_s30 = sld [smem:[#allocation18_spill]] }
  0x7b   : > { %605 = vadd.xlane.f32.xlu0 %v604_v1  ;;  %s1793_s23 = sshll.u32 %s2245_s27, 7  ;;  %s591_s17 = scalar_lea.vmem [#allocation9], %s1746_s21 }
  0x7c   : > { %s1634_s26 = sshll.u32 %s591_s17, 4  ;;  %s1620_s27 = scalar_lea.sflag [#allocation5], %s589_s1  ;;  %s2711_s26 = int_to_ptr.vmem [resolvable:$true] %s1634_s26 }
  0x7f   : > { %634 = vadd.xlane.f32.xlu0 %v604_v1 }
  0x80   : > { %p2816_p4 = scmp.ne.s32.totalorder %s2814_s30, 0 }
 0x108   : > { %v606_v2 = vpop.xlane.xlu0 %605 }
 0x109   : > { %v608_v3 = vmul.f32 0.03125, %v606_v2 }
 0x10b   : > { %v609_v4 = vsub.f32 %v2511_v0, %v608_v3 }
 0x10c   : > { %v635_v5 = vpop.xlane.xlu0 %634 }
 0x10d   : > { %v636_v6 = vmul.f32 0.03125, %v635_v5  ;;  %v610_v7 = vmul.f32 %v609_v4, %v609_v4 }
 0x10f   : > { %v637_v8 = vsub.f32 %v2511_v0, %v636_v6  ;;  %v611_v9 = vsel %vm603_vm0, %v610_v7, 0.0  ;;  %v847_v6 = vlaneseq }
 0x110   : > { %612 = vadd.xlane.f32.xlu1 %v611_v9 }
 0x111   : > { %v638_v10 = vmul.f32 %v637_v8, %v637_v8  ;;  %v848_v7 = vshrl.u32 %v847_v6, 7 }
 0x113   : > { %v639_v11 = vsel %vm603_vm0, %v638_v10, 0.0 }
 0x114   : > { %640 = vadd.xlane.f32.xlu1 %v639_v11 }
 0x19d   : > { %v613_v15 = vpop.xlane.xlu1 %612 }
 0x19e   : > { %v614_v16 = vmul.f32 0.03125, %v613_v15 }
 0x1a0   : > { %v615_v17 = vadd.f32 1e-05, %v614_v16 }
 0x1a1   : > { %v641_v18 = vpop.xlane.xlu1 %640 }
 0x1a2   : > { %2059 = vrsqrt.f32 %v615_v17  ;;  %v642_v19 = vmul.f32 0.03125, %v641_v18 }
 0x1a4   : > { %v643_v20 = vadd.f32 1e-05, %v642_v19 }
 0x1a6   : > { %2061 = vrsqrt.f32 %v643_v20 }
 0x1ac   : > { %v2060_v21 = vpop.eup %2059 }
 0x1ad   : > { %v617_v23 = vmul.f32 %v2060_v21, %v609_v4 }
 0x1af   : > { %v624_v25 = vmul.f32 %v1748_v22, %v617_v23 }
 0x1b0   : > { %v2062_v29 = vpop.eup %2061 }
 0x1b1   : > { %v631_v26 = vadd.f32 %v1749_v24, %v624_v25  ;;  %v645_v31 = vmul.f32 %v2062_v29, %v637_v8  ;;  %v852_v8 = vand.u32 127, %v847_v6 }
 0x1b3   : > { %v632_v28 = vpack.c.bf16 %v631_v26, %v631_v26  ;;  %v646_v33 = vmul.f32 %v1748_v22, %v645_v31  ;;  %vm853_vm4 = vcmp.le.s32.totalorder %v852_v8, %v848_v7 }
 0x1b5   : > { %1844 = vmatmul.mubr.msk.bf16.vlgmr.msra.gmra.mrb[0].mxu0 %vm603_vm0, %v632_v28  ;;  %v647_v35 = vadd.f32 %v1749_v24, %v646_v33 }
 0x1b6   : > { %1848 = vmatpush3.bf16.msra.mxu0 %v2043_v27  ;;  %1851 = vmatprep.mubr.msk.bf16.mxu0 %vm2259_vm1, %v2258_v13 }
 0x1b7   : > { %1849 = vmatprep.subr.bf16.mxu0 %v2258_v13  ;;  %v648_v36 = vpack.c.bf16 %v647_v35, %v647_v35 }
 0x1ba   : > { %1850 = vmatpush3.bf16.msra.mxu0 %v2044_v30 }
 0x1bb   : > { %1855 = vmatprep.subr.bf16.mxu0 %v2258_v13 }
 0x1bd   : > { %1852 = vmatmul.mubr.msk.bf16.vlgmr.msra.gmra.mrb[4].mxu0 %vm603_vm0, %v632_v28 }
 0x1be   : > { %1856 = vmatpush3.bf16.msra.mxu0 %v2045_v32  ;;  %1859 = vmatprep.mubr.msk.bf16.mxu0 %vm2259_vm1, %v2258_v13 }
 0x1bf   : > { %1857 = vmatprep.subr.bf16.mxu0 %v2258_v13 }
 0x1c2   : > { %1858 = vmatpush3.bf16.msra.mxu0 %v2046_v34 }
 0x1c3   : > { %1869 = vmatprep.subr.bf16.mxu0 %v2258_v13 }
 0x1c5   : > { %1860 = vmatmul.mubr.msk.bf16.vlgmr.msra.gmra.mrb[8].mxu0 %vm603_vm0, %v648_v36 }
 0x1c6   : > { %1871 = vmatprep.mubr.msk.bf16.mxu0 %vm2259_vm1, %v2258_v13 }
 0x288   : > { %v709_v38 = vpop.f32.mrb[0].mxu0 }
 0x289   : > { %v710_v39 = vadd.f32 %v1750_v37, %v709_v38  ;;  %v1845_v40 = vpop.f32.mrb[1].mxu0 }
 0x28a   : > { %v712_v41 = vpop.f32.mrb[2].mxu0 }
 0x28b   : > { %v715_v42 = vpack.c.bf16 %v710_v39, %v710_v39  ;;  %v1846_v43 = vpop.f32.mrb[3].mxu0 }
 0x28d   : > { %969 = vrot.lane.b32.xlu0 %v715_v42, %s2260_s19  ;;  %v859_v44 = vsel %vm854_vm2, %v715_v42, 0 }
 0x28e   : > { %1864 = vmatpush3.bf16.xpose.msra.mxu1 %v859_v44 }
 0x28f   : > { %1875 = vmatprep.subr.bf16.mxu1 %v2258_v13 }
 0x290   : > { %v773_v46 = vpop.f32.mrb[4].mxu0 }
 0x291   : > { %v774_v47 = vadd.f32 %v1754_v45, %v773_v46  ;;  %1212 = vrot.lane.b32.xlu0 %v715_v42, %s2261_s22  ;;  %v1853_v48 = vpop.f32.mrb[5].mxu0 }
 0x292   : > { %v776_v49 = vpop.f32.mrb[6].mxu0 }
 0x293   : > { %v2568_v50 = vpack.c.bf16 %v774_v47, %v774_v47  ;;  %v1854_v51 = vpop.f32.mrb[7].mxu0 }
 0x295   : > { %v920_v52 = vsel %vm918_vm3, %v2568_v50, 0 }
 0x296   : > { %1870 = vmatpush3.bf16.msra.mxu0 %v920_v52 }
 0x297   : > { %1881 = vmatprep.subr.bf16.mxu0 %v2258_v13 }
 0x298   : > { %v840_v54 = vpop.f32.mrb[8].mxu0 }
 0x299   : > { %v841_v55 = vadd.f32 %v1758_v53, %v840_v54  ;;  %v1861_v56 = vpop.f32.mrb[9].mxu0 }
 0x29a   : > { %v843_v57 = vpop.f32.mrb[10].mxu0 }
 0x29b   : > { %v846_v58 = vpack.c.bf16 %v841_v55, %v841_v55  ;;  %v1862_v59 = vpop.f32.mrb[11].mxu0 }
 0x29d   : > { %966 = vrot.lane.b32.xlu1 %v846_v58, %s2260_s19  ;;  %1866 = vmatmul.mubr.msk.bf16.vlgmr.msra.gmra.mrb[0].mxu1 %vm854_vm2, %v846_v58 }
 0x29e   : > { %1877 = vmatprep.mubr.msk.bf16.mxu1 %vm2259_vm1, %v2258_v13 }
 0x2a1   : > { %1091 = vrot.lane.b32.xlu1 %v715_v42, %s2262_s29 }
 0x2a5   : > { %1089 = vrot.lane.b32.xlu1 %v846_v58, %s2262_s29 }
 0x2a9   : > { %1210 = vrot.lane.b32.xlu1 %v846_v58, %s2261_s22 }
 0x2ff   : > { %v970_v60 = vpop.permute.xlu0 %969 }
 0x300   : > { %v975_v61 = vsel %vm854_vm2, %v970_v60, 0 }
 0x301   : > { %1876 = vmatpush3.bf16.xpose.msra.mxu1 %v975_v61 }
 0x302   : > { %1887 = vmatprep.subr.bf16.mxu1 %v2258_v13 }
 0x303   : > { %v1213_v2 = vpop.permute.xlu0 %1212 }
 0x304   : > { %v1218_v4 = vsel %vm854_vm2, %v1213_v2, 0 }
 0x30f   : > { %v967_v62 = vpop.permute.xlu1 %966 }
 0x310   : > { %1878 = vmatmul.mubr.msk.bf16.vlgmr.msra.gmra.mrb[4].mxu1 %vm854_vm2, %v967_v62 }
 0x311   : > { %1889 = vmatprep.mubr.msk.bf16.mxu1 %vm2259_vm1, %v2258_v13 }
 0x313   : > { %v1092_v63 = vpop.permute.xlu1 %1091 }
 0x314   : > { %v1097_v1 = vsel %vm854_vm2, %v1092_v63, 0 }
 0x315   : > { %1888 = vmatpush3.bf16.xpose.msra.mxu1 %v1097_v1 }
 0x316   : > { %1899 = vmatprep.subr.bf16.mxu1 %v2258_v13 }
 0x317   : > { %v1090_v3 = vpop.permute.xlu1 %1089 }
 0x31b   : > { %v1211_v5 = vpop.permute.xlu1 %1210 }
 0x31c   : > { %1890 = vmatmul.mubr.msk.bf16.vlgmr.msra.gmra.mrb[8].mxu1 %vm854_vm2, %v1090_v3 }
 0x31d   : > { %1900 = vmatpush3.bf16.xpose.msra.mxu1 %v1218_v4  ;;  %1901 = vmatprep.mubr.msk.bf16.mxu1 %vm2259_vm1, %v2258_v13 }
 0x31e   : > { %1911 = vmatprep.subr.bf16.mxu1 %v2258_v13 }
 0x324   : > { %1902 = vmatmul.mubr.msk.bf16.vlgmr.msra.gmra.mrb[12].mxu1 %vm854_vm2, %v1211_v5 }
 0x325   : > { %1915 = vmatprep.mubr.msk.bf16.mxu1 %vm2259_vm1, %v2258_v13 }
 0x370   : > { %v895_v9 = vpop.f32.mrb[0].mxu1 }
 0x371   : > { %v901_v10 = vmul.f32 0.35355338, %v895_v9  ;;  %v1867_v11 = vpop.f32.mrb[1].mxu1 }
 0x372   : > { %v898_v12 = vpop.f32.mrb[2].mxu1 }
 0x373   : > { %v1868_v14 = vpop.f32.mrb[3].mxu1  ;;  %v902_v15 = vsel %vm853_vm4, %v901_v10, -1e+30 }
 0x374   : > { %v903_v16 = vsel %vm854_vm2, %v902_v15, -inf }
 0x375   : > { %904 = vmax.xlane.f32.xlu0 %v903_v16 }
 0x3e3   : > { %v1011_v17 = vpop.f32.mrb[4].mxu1 }
 0x3e4   : > { %v1017_v18 = vmul.f32 0.35355338, %v1011_v17  ;;  %v1879_v19 = vpop.f32.mrb[5].mxu1 }
 0x3e5   : > { %v1014_v20 = vpop.f32.mrb[6].mxu1 }
 0x3e6   : > { %v1880_v21 = vpop.f32.mrb[7].mxu1  ;;  %v1018_v22 = vsel %vm853_vm4, %v1017_v18, -1e+30 }
 0x3e7   : > { %v1019_v23 = vsel %vm854_vm2, %v1018_v22, -inf }
 0x3e8   : > { %1020 = vmax.xlane.f32.xlu1 %v1019_v23 }
 0x3ef   : > { %v1133_v24 = vpop.f32.mrb[8].mxu1 }
 0x3f0   : > { %v1139_v25 = vmul.f32 0.35355338, %v1133_v24  ;;  %v1891_v26 = vpop.f32.mrb[9].mxu1 }
 0x3f1   : > { %v1136_v27 = vpop.f32.mrb[10].mxu1 }
 0x3f2   : > { %v1892_v28 = vpop.f32.mrb[11].mxu1  ;;  %v1140_v29 = vsel %vm853_vm4, %v1139_v25, -1e+30 }
 0x3f3   : > { %v1141_v30 = vsel %vm854_vm2, %v1140_v29, -inf }
 0x3f4   : > { %1142 = vmax.xlane.f32.xlu0 %v1141_v30 }
 0x3f7   : > { %v1254_v31 = vpop.f32.mrb[12].mxu1 }
 0x3f8   : > { %v1260_v32 = vmul.f32 0.35355338, %v1254_v31  ;;  %v1903_v33 = vpop.f32.mrb[13].mxu1 }
 0x3f9   : > { %v1257_v34 = vpop.f32.mrb[14].mxu1  ;;  %v2047_v33 = vld [vmem:[%s2766_s9] sm:$0xff]  }
 0x3fa   : > { %v1904_v35 = vpop.f32.mrb[15].mxu1  ;;  %v1261_v36 = vsel %vm853_vm4, %v1260_v32, -1e+30  ;;  %1912 = vmatpush3.bf16.msra.mxu1 %v2047_v33  ;;  %v2048_v34 = vld [vmem:[%s2766_s9 + $0x8] sm:$0xff]  }
 0x3fb   : > { %v1262_v37 = vsel %vm854_vm2, %v1261_v36, -inf  ;;  %1913 = vmatprep.subr.bf16.mxu1 %v2258_v13 }
 0x3fc   : > { %1263 = vmax.xlane.f32.xlu0 %v1262_v37 }
 0x3fe   : > { %1914 = vmatpush3.bf16.msra.mxu1 %v2048_v34 }
 0x3ff   : > { %1927 = vmatprep.subr.bf16.mxu1 %v2258_v13 }
 0x402   : > { %v905_v38 = vpop.xlane.xlu0 %904 }
 0x403   : > { %v906_v39 = vsub.f32 %v902_v15, %v905_v38 }
 0x405   : > { %v907_v40 = vmul.f32 1.442695, %v906_v39 }
 0x407   : > { %2063 = vpow2.f32 %v907_v40 }
 0x411   : > { %v2064_v41 = vpop.eup %2063 }
 0x412   : > { %v909_v42 = vsel %vm854_vm2, %v2064_v41, 0.0 }
 0x413   : > { %910 = vadd.xlane.f32.xlu0 %v909_v42 }
 0x475   : > { %v1021_v43 = vpop.xlane.xlu1 %1020 }
 0x476   : > { %v1022_v44 = vsub.f32 %v1018_v22, %v1021_v43 }
 0x478   : > { %v1023_v45 = vmul.f32 1.442695, %v1022_v44  ;;  %v1773_v44 = vld [vmem:[%s2767_s10] ss:$0 sm:$0xff] }
 0x47a   : > { %2065 = vpow2.f32 %v1023_v45 }
 0x481   : > { %v1143_v46 = vpop.xlane.xlu0 %1142 }
 0x482   : > { %v1144_v47 = vsub.f32 %v1140_v29, %v1143_v46 }
 0x484   : > { %v2066_v48 = vpop.eup %2065  ;;  %v1145_v49 = vmul.f32 1.442695, %v1144_v47 }
 0x485   : > { %v1025_v51 = vsel %vm854_vm2, %v2066_v48, 0.0 }
 0x486   : > { %2067 = vpow2.f32 %v1145_v49  ;;  %1026 = vadd.xlane.f32.xlu1 %v1025_v51 }
 0x489   : > { %v1264_v54 = vpop.xlane.xlu0 %1263 }
 0x48a   : > { %v1265_v56 = vsub.f32 %v1261_v36, %v1264_v54 }
 0x48c   : > { %v1266_v57 = vmul.f32 1.442695, %v1265_v56 }
 0x490   : > { %v2068_v52 = vpop.eup %2067 }
 0x491   : > { %v1147_v53 = vsel %vm854_vm2, %v2068_v52, 0.0 }
 0x492   : > { %1148 = vadd.xlane.f32.xlu0 %v1147_v53 }
 0x497   : > { %1153 = vrot.lane.b32.xlu1 %v2568_v50, %s2262_s29 }
 0x4a0   : > { %v911_v55 = vpop.xlane.xlu0 %910 }
 0x4a1   : > { %2069 = vrcp.f32 %v911_v55 }
 0x4a2   : > { %2071 = vpow2.f32 %v1266_v57 }
 0x4a8   : > { %1032 = vrot.lane.b32.xlu0 %v2568_v50, %s2260_s19 }
 0x4ab   : > { %v2070_v58 = vpop.eup %2069 }
 0x4ac   : > { %v913_v59 = vmul.f32 %v2070_v58, %v2064_v41  ;;  %v2072_v61 = vpop.eup %2071  ;;  %v2049_v58 = vld [vmem:[%s2770_s13] sm:$0xff]  }
 0x4ad   : > { %v1268_v62 = vsel %vm854_vm2, %v2072_v61, 0.0 }
 0x4ae   : > { %v914_v60 = vpack.c.bf16 %v913_v59, %v913_v59  ;;  %v2051_v59 = vld [vmem:[%s2772_s15] sm:$0xff]  }
 0x4b0   : > { %1872 = vmatmul.mubr.msk.bf16.vlgmr.msra.gmra.mrb[12].mxu0 %vm854_vm2, %v914_v60 }
 0x4b1   : > { %1883 = vmatprep.mubr.msk.bf16.mxu0 %vm2259_vm1, %v2258_v13 }
 0x4bb   : > { %1269 = vadd.xlane.f32.xlu1 %v1268_v62 }
 0x4cc   : > { %1274 = vrot.lane.b32.xlu1 %v2568_v50, %s2261_s22  ;;  %s2815_s22 = sld [smem:[#allocation25_spill]] }
 0x4d2   : > { %s2709_s29 = scalar_lea.hbm %s2815_s22, %s1793_s23 }
 0x513   : > { %v1027_v63 = vpop.xlane.xlu1 %1026 }
 0x514   : > { %2073 = vrcp.f32 %v1027_v63 }
 0x517   : > { %v1154_v6 = vpop.permute.xlu1 %1153 }
 0x518   : > { %v1159_v8 = vsel %vm918_vm3, %v1154_v6, 0 }
 0x51e   : > { %v2074_v1 = vpop.eup %2073 }
 0x51f   : > { %v1149_v2 = vpop.xlane.xlu0 %1148  ;;  %v1029_v3 = vmul.f32 %v2074_v1, %v2066_v48  ;;  %v1777_v1 = vld [vmem:[%s2768_s11] ss:$0 sm:$0xff] }
 0x520   : > { %2075 = vrcp.f32 %v1149_v2 }
 0x521   : > { %v1030_v7 = vpack.c.bf16 %v1029_v3, %v1029_v3  ;;  %v1778_v3 = vld [vmem:[%s2769_s12] ss:$0 sm:$0xff] }
 0x523   : > { %v1033_v4 = vpop.permute.xlu0 %1032 }
 0x524   : > { %v1038_v5 = vsel %vm918_vm3, %v1033_v4, 0 }
 0x525   : > { %1882 = vmatpush3.bf16.msra.mxu0 %v1038_v5 }
 0x526   : > { %1893 = vmatprep.subr.bf16.mxu0 %v2258_v13 }
 0x528   : > { %1884 = vmatmul.mubr.msk.bf16.vlgmr.msra.gmra.mrb[16].mxu0 %vm854_vm2, %v1030_v7  ;;  %v2052_v7 = vld [vmem:[%s2772_s15 + $0x8] sm:$0xff]  }
 0x529   : > { %1894 = vmatpush3.bf16.msra.mxu0 %v1159_v8  ;;  %1895 = vmatprep.mubr.msk.bf16.mxu0 %vm2259_vm1, %v2258_v13  ;;  %v2053_v8 = vld [vmem:[%s2772_s15 + $0x10] sm:$0xff]  }
 0x52a   : > { %v2076_v50 = vpop.eup %2075  ;;  %1905 = vmatprep.subr.bf16.mxu0 %v2258_v13 }
 0x52b   : > { %v1151_v9 = vmul.f32 %v2076_v50, %v2068_v52  ;;  %v2054_v50 = vld [vmem:[%s2772_s15 + $0x18] sm:$0xff]  }
 0x52d   : > { %v1152_v10 = vpack.c.bf16 %v1151_v9, %v1151_v9  ;;  %v2055_v9 = vld [vmem:[%s2772_s15 + $0x20] sm:$0xff]  }
 0x530   : > { %1896 = vmatmul.mubr.msk.bf16.vlgmr.msra.gmra.mrb[20].mxu0 %vm854_vm2, %v1152_v10  ;;  %v2056_v10 = vld [vmem:[%s2772_s15 + $0x28] sm:$0xff]  }
 0x531   : > { %1907 = vmatprep.mubr.msk.bf16.mxu0 %vm2259_vm1, %v2258_v13 }
 0x548   : > { %v1270_v11 = vpop.xlane.xlu1 %1269 }
 0x549   : > { %2077 = vrcp.f32 %v1270_v11  ;;  %v2057_v11 = vld [vmem:[%s2772_s15 + $0x30] sm:$0xff]  }
 0x54c   : > { %v1275_v12 = vpop.permute.xlu1 %1274 }
 0x54d   : > { %v1280_v14 = vsel %vm918_vm3, %v1275_v12, 0  ;;  %v2058_v12 = vld [vmem:[%s2772_s15 + $0x38] sm:$0xff]  }
 0x54e   : > { %1906 = vmatpush3.bf16.msra.mxu0 %v1280_v14  ;;  %v1779_v14 = vld [vmem:[%s2771_s14] ss:$0 sm:$0xff] }
 0x54f   : > { %1919 = vmatprep.subr.bf16.mxu0 %v2258_v13 }
 0x553   : > { %v2078_v15 = vpop.eup %2077 }
 0x554   : > { %v1272_v16 = vmul.f32 %v2078_v15, %v2072_v61 }
 0x556   : > { %v1273_v17 = vpack.c.bf16 %v1272_v16, %v1272_v16 }
 0x558   : > { %1908 = vmatmul.mubr.msk.bf16.vlgmr.msra.gmra.mrb[24].mxu0 %vm854_vm2, %v1273_v17 }
 0x559   : > { %1923 = vmatprep.mubr.msk.bf16.mxu0 %vm2259_vm1, %v2258_v13  ;;  %1920 = vmatpush3.bf16.msra.mxu0 %v2049_v58 }
 0x55a   : > { %1921 = vmatprep.subr.bf16.mxu0 %v2258_v13 }
 0x583   : > { %v956_v18 = vpop.f32.mrb[12].mxu0 }
 0x584   : > { %v962_v19 = vpack.c.bf16 %v956_v18, %v956_v18  ;;  %v1873_v20 = vpop.f32.mrb[13].mxu0 }
 0x585   : > { %v959_v21 = vpop.f32.mrb[14].mxu0 }
 0x586   : > { %964 = vst.msk [vmem:[#allocation2] sm:$0xf] %vm963_vm5, %v962_v19  ;;  %v1874_v22 = vpop.f32.mrb[15].mxu0 }
 0x5fb   : > { %v1074_v23 = vpop.f32.mrb[16].mxu0 }
 0x5fc   : > { %v1796_v24 = vpack.c.bf16 %v1074_v23, %v1074_v23  ;;  %v1885_v25 = vpop.f32.mrb[17].mxu0 }
 0x5fd   : > { %v1077_v26 = vpop.f32.mrb[18].mxu0 }
 0x5fe   : > { %1084 = vrot.lane.b32.xlu1 %v1796_v24, %s2263_s20  ;;  %v1886_v27 = vpop.f32.mrb[19].mxu0  ;;  %s2167_s20 = scalar_lea.vmem %s2711_s26, 128 }
 0x5ff   : > { %p2168_p13 = scmp.ne.s32.totalorder %s2711_s26, %s2167_s20 }
 0x601   : > { %p2169_p8 = pnand %p2168_p13, %p2816_p4 }
 0x603   : > { %v1195_v28 = vpop.f32.mrb[20].mxu0  ;;  %p2170_p10 = pneg %p2169_p8 }
 0x604   : > { %v1797_v29 = vpack.c.bf16 %v1195_v28, %v1195_v28  ;;  %v1897_v30 = vpop.f32.mrb[21].mxu0 }
 0x605   : > { %v1198_v31 = vpop.f32.mrb[22].mxu0  ;;  %v1791_v30 = vld [vmem:[%s2813_s18] ss:$0 sm:$0xff] }
 0x606   : > { %1205 = vrot.lane.b32.xlu0 %v1797_v29, %s2264_s16  ;;  %v1898_v32 = vpop.f32.mrb[23].mxu0  ;;  %s2266_s16 = smov [#allocation9]  }
 0x607   : > { %s2171_s28 = sshll.u32 %s2266_s16, 4  ;;  %s2172_s28 = int_to_ptr.vmem [resolvable:$false] %s2171_s28 }
 0x608   : > { %s2173_s21 = scalar_lea.vmem %s2172_s28, 256  ;;  %p2174_p11 = scmp.lt.s32.totalorder %s2711_s26, %s2172_s28 }
 0x609   : > { %p2175_p3 = scmp.lt.s32.totalorder %s2173_s21, %s2167_s20 }
 0x60b   : > { %p2176_p5 = por %p2175_p3, %p2174_p11 }
 0x60d   : > { %p2177_p6 = pnand %p2176_p5, %p2170_p10 }
 0x62b   : > { %v1316_v35 = vpop.f32.mrb[24].mxu0 }
 0x62c   : > { %v1798_v36 = vpack.c.bf16 %v1316_v35, %v1316_v35  ;;  %v1909_v37 = vpop.f32.mrb[25].mxu0 }
 0x62d   : > { %v1319_v38 = vpop.f32.mrb[26].mxu0 }
 0x62e   : > { %1326 = vrot.lane.b32.xlu1 %v1798_v36, %s2265_s7  ;;  %v1910_v39 = vpop.f32.mrb[27].mxu0 }
 0x670   : > { %v1085_v40 = vpop.permute.xlu1 %1084 }
 0x671   : > { %1088 = vst.msk [vmem:[#allocation2] sm:$0xf] %vm1087_vm6, %v1085_v40 }
 0x678   : > { %v1206_v41 = vpop.permute.xlu0 %1205 }
 0x679   : > { %1209 = vst.msk [vmem:[#allocation2] sm:$0xf] %vm1208_vm7, %v1206_v41 }
 0x6a0   : > { %v1327_v42 = vpop.permute.xlu1 %1326 }
 0x6a1   : > { %1330 = vst.msk [vmem:[#allocation2] sm:$0xf] %vm1329_vm8, %v1327_v42 }
 0x6a8   : > { %v1331_v43 = vld [vmem:[#allocation2] sm:$0xf] }
 0x6a9   : > { %1916 = vmatmul.mubr.msk.bf16.vlgmr.msra.gmra.mrb[16].mxu1 %vm603_vm0, %v1331_v43 }
 0x6aa   : > { %1943 = vmatprep.mubr.msk.bf16.mxu1 %vm2259_vm1, %v2258_v13  ;;  %1928 = vmatpush3.bf16.msra.mxu1 %v2051_v59 }
 0x6ab   : > { %1929 = vmatprep.subr.bf16.mxu1 %v2258_v13 }
 0x6ae   : > { %1930 = vmatpush3.bf16.msra.mxu1 %v2052_v7 }
 0x6af   : > { %1931 = vmatprep.subr.bf16.mxu1 %v2258_v13 }
 0x6b2   : > { %1932 = vmatpush3.bf16.msra.mxu1 %v2053_v8 }
 0x6b3   : > { %1933 = vmatprep.subr.bf16.mxu1 %v2258_v13 }
 0x6b6   : > { %1934 = vmatpush3.bf16.msra.mxu1 %v2054_v50 }
 0x6b7   : > { %1935 = vmatprep.subr.bf16.mxu1 %v2258_v13 }
 0x6ba   : > { %1936 = vmatpush3.bf16.msra.mxu1 %v2055_v9 }
 0x6bb   : > { %1937 = vmatprep.subr.bf16.mxu1 %v2258_v13 }
 0x6be   : > { %1938 = vmatpush3.bf16.msra.mxu1 %v2056_v10 }
 0x6bf   : > { %1939 = vmatprep.subr.bf16.mxu1 %v2258_v13 }
 0x6c2   : > { %1940 = vmatpush3.bf16.msra.mxu1 %v2057_v11 }
 0x6c3   : > { %1941 = vmatprep.subr.bf16.mxu1 %v2258_v13 }
 0x6c6   : > { %1942 = vmatpush3.bf16.msra.mxu1 %v2058_v12 }
 0x77c   : > { %v1392_v45 = vpop.f32.mrb[16].mxu1 }
 0x77d   : > { %v1393_v46 = vadd.f32 %v1773_v44, %v1392_v45  ;;  %v1917_v47 = vpop.f32.mrb[17].mxu1 }
 0x77e   : > { %v1395_v48 = vpop.f32.mrb[18].mxu1 }
 0x77f   : > { %v2646_v49 = vadd.f32 %v1393_v46, %v2511_v0  ;;  %v1918_v51 = vpop.f32.mrb[19].mxu1  ;;  %v2050_v0 = vld [vmem:[%s2770_s13 + $0x8] sm:$0xff]  }
 0x780   : > { %1922 = vmatpush3.bf16.msra.mxu0 %v2050_v0 }
 0x781   : > { %v1401_v52 = vsel %vm603_vm0, %v2646_v49, 0.0 }
 0x782   : > { %1402 = vadd.xlane.f32.xlu0 %v1401_v52 }
 0x80f   : > { %v1403_v53 = vpop.xlane.xlu0 %1402 }
 0x810   : > { %v1404_v54 = vmul.f32 0.03125, %v1403_v53 }
 0x812   : > { %v1405_v55 = vsub.f32 %v2646_v49, %v1404_v54 }
 0x814   : > { %v1406_v56 = vmul.f32 %v1405_v55, %v1405_v55 }
 0x816   : > { %v1407_v57 = vsel %vm603_vm0, %v1406_v56, 0.0 }
 0x817   : > { %1408 = vadd.xlane.f32.xlu1 %v1407_v57 }
 0x8a4   : > { %v1409_v60 = vpop.xlane.xlu1 %1408 }
 0x8a5   : > { %v1410_v61 = vmul.f32 0.03125, %v1409_v60 }
 0x8a7   : > { %v1411_v62 = vadd.f32 1e-05, %v1410_v61 }
 0x8a9   : > { %2079 = vrsqrt.f32 %v1411_v62 }
 0x8b3   : > { %v2080_v63 = vpop.eup %2079 }
 0x8b4   : > { %v1413_v2 = vmul.f32 %v2080_v63, %v1405_v55 }
 0x8b6   : > { %v1420_v4 = vmul.f32 %v1777_v1, %v1413_v2 }
 0x8b8   : > { %v1427_v5 = vadd.f32 %v1778_v3, %v1420_v4 }
 0x8ba   : > { %v1428_v6 = vpack.c.bf16 %v1427_v5, %v1427_v5 }
 0x8bc   : > { %1924 = vmatmul.mubr.msk.bf16.vlgmr.msra.gmra.mrb[28].mxu0 %vm603_vm0, %v1428_v6 }
 0x98f   : > { %v1489_v15 = vpop.f32.mrb[28].mxu0 }
 0x990   : > { %v1490_v16 = vadd.f32 %v1779_v14, %v1489_v15  ;;  %v1925_v17 = vpop.f32.mrb[29].mxu0 }
 0x991   : > { %v1492_v18 = vpop.f32.mrb[30].mxu0 }
 0x992   : > { %v1496_v19 = vmul.f32 0.044715, %v1490_v16  ;;  %v1926_v20 = vpop.f32.mrb[31].mxu0  ;;  %v1495_v13 = vmul.f32 0.5, %v1490_v16 }
 0x994   : > { %v1497_v21 = vmul.f32 %v1496_v19, %v1490_v16 }
 0x996   : > { %v1498_v22 = vmul.f32 %v1497_v21, %v1490_v16 }
 0x998   : > { %v1499_v23 = vadd.f32 %v1498_v22, %v1490_v16 }
 0x99a   : > { %v1500_v24 = vmul.f32 0.7978846, %v1499_v23 }
 0x99c   : > { %2081 = vtanh.f32 %v1500_v24 }
 0x9a6   : > { %v2082_v25 = vpop.eup %2081 }
 0x9a7   : > { %v1502_v26 = vadd.f32 1.0, %v2082_v25 }
 0x9a9   : > { %v1503_v27 = vmul.f32 %v1502_v26, %v1495_v13 }
 0x9ab   : > { %v1504_v28 = vpack.c.bf16 %v1503_v27, %v1503_v27 }
 0x9ad   : > { %1944 = vmatmul.mubr.bf16.vlgmr.msra.gmra.mrb[20].mxu1 %v1504_v28 }
 0xa80   : > { %v1603_v29 = vpop.f32.mrb[20].mxu1 }
 0xa81   : > { %v1609_v31 = vadd.f32 %v1603_v29, %v2646_v49  ;;  %v1945_v32 = vpop.f32.mrb[21].mxu1 }
 0xa82   : > { %v1606_v33 = vpop.f32.mrb[22].mxu1 }
 0xa83   : > { %v1617_v34 = vadd.f32 %v1791_v30, %v1609_v31  ;;  %v1946_v35 = vpop.f32.mrb[23].mxu1 }
 0xa85   : > { %1618 = vst.msk [vmem:[%s591_s17] sm:$0xff] %vm603_vm0, %v1617_v34 }
 0xa86   : > { %2180 = shalt.err (!%p2177_p6)
}
 0xa87   : > { %s2181_s1 = scalar_lea.hbm %s2709_s29, 128  ;;  %s2185_s18 = scalar_lea.hbm %s2815_s22, 256 }
 0xa88   : > { %p2182_p7 = scmp.ne.s32.totalorder %s2709_s29, %s2181_s1  ;;  %p2186_p0 = scmp.lt.u32.totalorder %s2709_s29, %s2815_s22 }
 0xa89   : > { %p2187_p2 = scmp.lt.u32.totalorder %s2185_s18, %s2181_s1  ;;  %p2189_p13 = scmp.lt.u32.totalorder %s2181_s1, %s2709_s29 }
 0xa8a   : > { %p2183_p9 = pnand %p2182_p7, %p2816_p4 }
 0xa8b   : > { %p2188_p1 = por %p2187_p2, %p2186_p0 }
 0xa8c   : > { %p2184_p12 = pneg %p2183_p9 }
 0xa8d   : > { %p2190_p8 = por %p2189_p13, %p2188_p1 }
 0xa8f   : > { %p2191_p10 = pnand %p2190_p8, %p2184_p12 }
 0xa91   : > { %2194 = shalt.err (!%p2191_p10)
}
 0xa92   : > { %1959 = dma.vmem_to_hbm [thread:$0]  (%p2816_p4), %s2711_s26, 128, %s2709_s29, %s1620_s27  }
 0xa93 PF: > { %s2817_s24 = sld [smem:[#allocation16_spill]]  ;;  %s2818_s19 = sld [smem:[#allocation13_spill]] }
 0xa94   : > { %s2819_s20 = sld [smem:[#allocation19_spill]] }
 0xa99   : > { %p1981_p11 = scmp.ge.s32.totalorder %s2817_s24, 2  ;;  %s1646_s16 = sand.u32 1, %s2818_s19  }
 0xa9a   : > { %p2820_p3 = scmp.ne.s32.totalorder %s2819_s20, 0  ;;  %s1647_s28 = scalar_lea.sflag [#allocation5], %s1646_s16 }
 0xa9c   : > { %p1972_p5 = pnand %p1981_p11, %p2820_p3 }
 0xa9e   : > { %2228 = dma.done.wait (!%p1972_p5), %s1647_s28, 128  }
 0xa9f   : > { %2230 = vsyncadd (!%p1972_p5), %s1647_s28, 4294967168  ;;  %s32_s29 = sadd.s32 1, %s2817_s24   ;;  %s2821_s21 = sld [smem:[#allocation14_spill]] }
 0xaa0   : > { %p29_p6 = scmp.ge.s32.totalorder %s32_s29, 4   ;;  %s2822_s26 = sld [smem:[#allocation20_spill]] }
 0xaa1   : > { %s2823_s27 = sld [smem:[#allocation15_spill]]  ;;  %s2824_s28 = sld [smem:[#allocation17_spill]] }
 0xaa2   : > { %s2825_s24 = smov %s2237_s25  ;;  %31 = sbr.rel (!%p29_p6) target bundleno = 12 (0xc), region = 137 }
 0xaa5   : > { %s2826_s25 = smov %s2821_s21 }
 0xaa9   :  { %1652 = vsyncpa [#allocation4], 1 }
 0xaaa   :  { %1654 = vsyncpa [#allocation4 + $0x1], 1 }
 0xaab   :  { %1655 = vsyncpa [#allocation7], 1 }
 0xaac   :  { %1656 = vsyncpa [#allocation5], 1 }
 0xaad   :  { %1658 = vsyncpa [#allocation5 + $0x1], 1 }

</bundles_post_ra>
